<compile_context>
chip_gen: v5e
topology: v5e:2x2
jax: 0.10.0
libtpu: 0.0.40
codegen_flags: <defaults>
</compile_context>

<pallas_src>
import math

import jax
import jax.numpy as jnp
from jax import lax
from jax.experimental import pallas as pl
from jax.experimental.pallas import tpu as pltpu

LN_EPS = 1e-5          # nn.LayerNorm default eps
ATT_SLOPE = 0.2        # GATConv attention leaky_relu default negative_slope
ACT_SLOPE = 0.1        # F.leaky_relu(negative_slope=0.1) in the module
MASK_BIG = 1e9         # finite sentinel (no -inf) for masked attention / max pool
LANE = 128


def _round_up(v, m):
    return ((v + m - 1) // m) * m


def make_gat_graph_kernel(num_layers, heads, f_head, dh, dp, num_graphs):
    """Kernel for a fixed layer/head count.  Feature width is lane-padded to DP;
    padded lanes stay exactly 0 through every layer because the per-layer value
    is rebuilt from concatenated head outputs + explicit zero padding and the
    bias / LN gamma-beta are zero-padded."""
    inv_dh = 1.0 / float(dh)
    pad = dp - dh

    def kernel(x_ref, adjb_ref, w_ref, asrc_t_ref, adst_ref, bias_ref,
               lng_ref, lnb_ref, mean_mask_ref, gmask_ref, wf_ref, bf_ref,
               out_ref):
        feat = x_ref[...]                               # [N, DP] f32 (value)
        n = feat.shape[0]
        # Hoisted mask: 0 for edges (self-loops incl.), -1e9 elsewhere.
        adj_bias = adjb_ref[...].astype(jnp.float32)    # [N, N]

        for l in range(num_layers):                     # static unroll, small L
            # GATConv linear transform: bf16 weights, f32 accumulation (MXU).
            xp = jnp.dot(feat.astype(jnp.bfloat16), w_ref[l],
                         preferred_element_type=jnp.float32)          # [N, DP]
            # Attention scores.  Source scores come out directly in [H, N] row
            # layout via the q@k.T (NT) dot_general pattern -> no transposes.
            s_dst = jnp.dot(xp, adst_ref[l],
                            preferred_element_type=jnp.float32)       # [N, H]
            s_src_t = lax.dot_general(
                asrc_t_ref[l], xp,
                dimension_numbers=(((1,), (1,)), ((), ())),
                preferred_element_type=jnp.float32)                   # [H, N]

            heads_out = []
            for h in range(heads):                      # static unroll, small H
                e = s_dst[:, h:h + 1] + s_src_t[h:h + 1, :]           # [N, N]
                e = jnp.where(e > 0.0, e, ATT_SLOPE * e)
                e = e + adj_bias                        # hoisted mask (add only)
                m = jnp.max(e, axis=1, keepdims=True)
                p = jnp.exp(e - m)                      # masked entries -> 0
                rowsum = jnp.sum(p, axis=1, keepdims=True)            # [N, 1]
                xh = xp[:, h * f_head:(h + 1) * f_head]               # [N, F]
                # Unnormalized aggregation on the MXU in bf16 (f32 accumulate);
                # normalization deferred to a cheap EUP reciprocal + multiply.
                agg = jnp.dot(p.astype(jnp.bfloat16), xh.astype(jnp.bfloat16),
                              preferred_element_type=jnp.float32)     # [N, F]
                heads_out.append(agg * pl.reciprocal(rowsum, approx=True))
            if pad:
                heads_out.append(jnp.zeros((n, pad), jnp.float32))
            z = jnp.concatenate(heads_out, axis=1) + bias_ref[l]      # [N, DP]

            # Single-pass LayerNorm stats over the real feature width.  Padded
            # lanes of z are exactly 0, so they contribute nothing to either
            # sum and the 1/dh scaling stays correct.
            mu = jnp.sum(z, axis=1, keepdims=True) * inv_dh
            ms = jnp.sum(z * z, axis=1, keepdims=True) * inv_dh
            var = ms - mu * mu
            zn = (z - mu) * lax.rsqrt(var + LN_EPS)
            zn = zn * lng_ref[l] + lnb_ref[l]           # padded gamma/beta = 0
            feat = jnp.where(zn > 0.0, zn, ACT_SLOPE * zn)

        # Pooling epilogue.
        #   mean pool: one MXU matmul with a 1/count pre-scaled membership mask
        #   max  pool: per-graph where + sublane reduction (no [G,N,DP] tensor)
        meanp = jnp.dot(mean_mask_ref[...], feat,
                        preferred_element_type=jnp.float32)            # [G, DP]
        gmask = gmask_ref[...]                                          # [N, G]
        max_rows = []
        for g in range(num_graphs):                     # static unroll, small G
            member = gmask[:, g:g + 1] > 0.0
            max_rows.append(jnp.max(jnp.where(member, feat, -MASK_BIG),
                                    axis=0, keepdims=True))            # [1, DP]
        maxp = jnp.concatenate(max_rows, axis=0)                        # [G, DP]

        # Fused final Linear on [max | mean]: ONE matmul against the
        # concatenated weight, ONE lane-dense [G, EP] store.
        pooled = jnp.concatenate([maxp, meanp], axis=1)                 # [G, 2DP]
        out_ref[...] = (jnp.dot(pooled, wf_ref[...],
                                preferred_element_type=jnp.float32)
                        + bf_ref[...])

    return kernel


def gat_graph_forward(x, adj, graph_mask, layer_params, wf, bf_vec):
    """x: [N, Din]; adj[i, j] = 1 if edge j->i (self-loops included);
    graph_mask: [N, G] one-hot node->graph membership;
    layer_params: list of (W [in, H*F], att_src [H, F], att_dst [H, F],
                           bias [H*F], ln_gamma [H*F], ln_beta [H*F]);
    wf: [2*H*F, E] final Linear weight ([max | mean] halves); bf_vec: [E]."""
    N, din = x.shape
    heads, f_head = layer_params[0][1].shape
    dh = heads * f_head
    num_layers = len(layer_params)
    G = graph_mask.shape[1]
    E = wf.shape[1]
    DP = _round_up(max(din, dh), LANE)       # lane-padded feature width
    EP = _round_up(E, LANE)                  # lane-padded output width

    f32 = jnp.float32
    x_pad = jnp.zeros((N, DP), f32).at[:, :din].set(x)
    # Precomputed additive mask (0 / -1e9), carried in bf16 to halve the
    # resident [N, N] footprint (matters on v7x's 64 MiB VMEM as N grows).
    adj_bias = ((adj.astype(f32) - 1.0) * MASK_BIG).astype(jnp.bfloat16)

    w_l, asrc_l, adst_l, b_l, g_l, bt_l = [], [], [], [], [], []
    for (W, a_src, a_dst, bias, ln_g, ln_b) in layer_params:
        in_dim = W.shape[0]
        w_l.append(jnp.zeros((DP, DP), f32).at[:in_dim, :dh].set(W))
        ast = jnp.zeros((heads, DP), f32)
        adt = jnp.zeros((DP, heads), f32)
        for h in range(heads):
            ast = ast.at[h, h * f_head:(h + 1) * f_head].set(a_src[h])
            adt = adt.at[h * f_head:(h + 1) * f_head, h].set(a_dst[h])
        asrc_l.append(ast)
        adst_l.append(adt)
        b_l.append(jnp.zeros((1, DP), f32).at[0, :dh].set(bias))
        g_l.append(jnp.zeros((1, DP), f32).at[0, :dh].set(ln_g))
        bt_l.append(jnp.zeros((1, DP), f32).at[0, :dh].set(ln_b))

    w_all = jnp.stack(w_l).astype(jnp.bfloat16)      # [L, DP, DP]  bf16 weights
    asrc_t_all = jnp.stack(asrc_l)                   # [L, H, DP]
    adst_all = jnp.stack(adst_l)                     # [L, DP, H]
    bias_all = jnp.stack(b_l)                        # [L, 1, DP]
    lng_all = jnp.stack(g_l)                         # [L, 1, DP]
    lnb_all = jnp.stack(bt_l)                        # [L, 1, DP]

    counts = jnp.sum(graph_mask, axis=0)             # [G] nodes per graph
    mean_mask_t = (graph_mask / counts[None, :]).T   # [G, N] mean-pool weights

    # Fused final-Linear weight: rows [0:DP) act on max-pool, [DP:2DP) on mean.
    wf_cat = jnp.zeros((2 * DP, EP), f32)
    wf_cat = wf_cat.at[:dh, :E].set(wf[:dh])
    wf_cat = wf_cat.at[DP:DP + dh, :E].set(wf[dh:])
    bf_p = jnp.zeros((1, EP), f32).at[0, :E].set(bf_vec)

    operands = (x_pad, adj_bias, w_all, asrc_t_all, adst_all, bias_all,
                lng_all, lnb_all, mean_mask_t, graph_mask.astype(f32),
                wf_cat, bf_p)

    # Scoped-VMEM budget sized from the actual buffers, capped by the hardware
    # capacity (v7x has only 64 MiB per TensorCore; v5e/v6e have 128 MiB).
    total_bytes = sum(int(o.size) * o.dtype.itemsize for o in operands)
    total_bytes += G * EP * 4                        # output
    try:
        info = pltpu.get_tpu_info()
        hw_vmem = int(getattr(info, "vmem_capacity_bytes", 64 * 1024 * 1024))
    except Exception:                                # pragma: no cover
        hw_vmem = 64 * 1024 * 1024                   # conservative (v7x per-TC)
    want = max(16 * 1024 * 1024, 4 * total_bytes)
    vmem_limit = int(max(4 * 1024 * 1024,
                         min(hw_vmem - 2 * 1024 * 1024, want)))

    vmem = pl.BlockSpec(memory_space=pltpu.MemorySpace.VMEM)
    kernel = make_gat_graph_kernel(num_layers, heads, f_head, dh, DP, G)
    out_pad = pl.pallas_call(
        kernel,
        out_shape=jax.ShapeDtypeStruct((G, EP), f32),
        in_specs=[vmem] * len(operands),
        out_specs=vmem,
        compiler_params=pltpu.CompilerParams(vmem_limit_bytes=vmem_limit),
    )(*operands)
    return out_pad[:, :E]


# ---------------- pure-JAX reference (faithful f32 GATConv semantics) --------
def ref_forward(x, adj, graph_mask, layer_params, wf, bf_vec):
    N = x.shape[0]
    heads, f_head = layer_params[0][1].shape
    dh = heads * f_head
    out = x
    for (W, a_src, a_dst, bias, ln_g, ln_b) in layer_params:
        xp = out @ W                                        # [N, H*F]
        xh = xp.reshape(N, heads, f_head)
        ss = jnp.einsum('nhf,hf->nh', xh, a_src)            # source scores
        sd = jnp.einsum('nhf,hf->nh', xh, a_dst)            # destination scores
        e = sd[:, None, :] + ss[None, :, :]                 # [N_dst, N_src, H]
        e = jnp.where(e > 0, e, ATT_SLOPE * e)
        msk = (adj > 0)[:, :, None]
        e = jnp.where(msk, e, -MASK_BIG)
        e = e - jnp.max(e, axis=1, keepdims=True)
        p = jnp.exp(e) * msk
        alpha = p / jnp.sum(p, axis=1, keepdims=True)
        agg = jnp.einsum('ijh,jhf->ihf', alpha, xh).reshape(N, dh) + bias
        mu = jnp.mean(agg, axis=1, keepdims=True)
        var = jnp.mean((agg - mu) ** 2, axis=1, keepdims=True)
        z = (agg - mu) / jnp.sqrt(var + LN_EPS) * ln_g + ln_b
        out = jnp.where(z > 0, z, ACT_SLOPE * z)
    counts = jnp.sum(graph_mask, axis=0)
    meanp = (graph_mask.T @ out) / counts[:, None]
    neg = (graph_mask.T[:, :, None] - 1.0) * MASK_BIG
    maxp = jnp.max(out[None, :, :] + neg, axis=1)
    return maxp @ wf[:dh] + meanp @ wf[dh:] + bf_vec


if __name__ == "__main__":
    # Small deterministic problem: 2 ring graphs x 8 nodes, 8-dim input,
    # 4 heads x 8 hidden (concat -> 32), 3 layers, embed_dim 16.
    input_dim, hidden_dim, heads, embed_dim, num_layers = 8, 8, 4, 16, 3
    nodes_per_graph, num_graphs = 8, 2
    N = nodes_per_graph * num_graphs
    dh = hidden_dim * heads

    key = jax.random.PRNGKey(0)
    key, kx = jax.random.split(key)
    x = jax.random.normal(kx, (N, input_dim), jnp.float32)

    # edge_index for two undirected ring graphs (both directions listed).
    src, dst = [], []
    for g in range(num_graphs):
        base = g * nodes_per_graph
        for i in range(nodes_per_graph):
            a, b = base + i, base + (i + 1) % nodes_per_graph
            src += [a, b]
            dst += [b, a]
    edge_index = jnp.array([src, dst], dtype=jnp.int32)          # [2, E]
    batch = jnp.repeat(jnp.arange(num_graphs, dtype=jnp.int32), nodes_per_graph)
    # edge_attr is accepted by the module's forward but GATConv is built without
    # edge_dim, so edge features never enter the computation -> ignored here.
    # TODO(synk): add att_edge path if GATConv is ever constructed with edge_dim.

    # Dense glue shared by kernel wrapper and reference:
    # adjacency mask A[dst, src] = 1 with self-loops (GATConv add_self_loops=True),
    # and node -> graph one-hot membership.
    adj = jnp.zeros((N, N), jnp.float32).at[edge_index[1], edge_index[0]].set(1.0)
    adj = jnp.maximum(adj, jnp.eye(N, dtype=jnp.float32))
    graph_mask = (batch[:, None] == jnp.arange(num_graphs)[None, :]).astype(jnp.float32)

    # Parameters: GATConv lin W [in, H*F] (no bias), att_src/att_dst [H, F],
    # conv bias [H*F], LayerNorm gamma/beta [H*F], final Linear [2*H*F, E].
    layer_params = []
    for l in range(num_layers):
        in_dim = input_dim if l == 0 else dh
        key, k1, k2, k3, k4, k5, k6 = jax.random.split(key, 7)
        wb = 1.0 / math.sqrt(in_dim)
        ab = 1.0 / math.sqrt(hidden_dim)
        W = jax.random.uniform(k1, (in_dim, dh), jnp.float32, -wb, wb)
        a_src = jax.random.uniform(k2, (heads, hidden_dim), jnp.float32, -ab, ab)
        a_dst = jax.random.uniform(k3, (heads, hidden_dim), jnp.float32, -ab, ab)
        bias = jax.random.uniform(k4, (dh,), jnp.float32, -0.1, 0.1)
        ln_g = 1.0 + 0.1 * jax.random.uniform(k5, (dh,), jnp.float32, -1.0, 1.0)
        ln_b = 0.1 * jax.random.uniform(k6, (dh,), jnp.float32, -1.0, 1.0)
        layer_params.append((W, a_src, a_dst, bias, ln_g, ln_b))

    key, kf, kb = jax.random.split(key, 3)
    fb = 1.0 / math.sqrt(2 * dh)
    wf = jax.random.uniform(kf, (2 * dh, embed_dim), jnp.float32, -fb, fb)
    bf_vec = jax.random.uniform(kb, (embed_dim,), jnp.float32, -fb, fb)

    out = gat_graph_forward(x, adj, graph_mask, layer_params, wf, bf_vec)
    out = jax.block_until_ready(out)

    ref = ref_forward(x, adj, graph_mask, layer_params, wf, bf_vec)
    assert out.shape == (num_graphs, embed_dim)
    assert bool(jnp.all(jnp.isfinite(out)))
    # bf16 weight + bf16 p@xh matmuls and approx reciprocal in the kernel vs a
    # full-f32 reference, compounded over 3 layers -> 5e-2 tolerance.
    max_err = float(jnp.max(jnp.abs(out - ref)))
    assert bool(jnp.allclose(out, ref, rtol=5e-2, atol=5e-2)), f"max abs err {max_err}"

    print("KERNEL_OK")
</pallas_src>

<mosaic_0001>
module attributes {stable_mosaic.version = 11 : i64} {
  func.func @kernel(%arg0: memref<16x128xf32, #tpu.memory_space<vmem>>, %arg1: memref<16x16xbf16, #tpu.memory_space<vmem>>, %arg2: memref<3x128x128xbf16, #tpu.memory_space<vmem>>, %arg3: memref<3x4x128xf32, #tpu.memory_space<vmem>>, %arg4: memref<3x128x4xf32, #tpu.memory_space<vmem>>, %arg5: memref<3x1x128xf32, #tpu.memory_space<vmem>>, %arg6: memref<3x1x128xf32, #tpu.memory_space<vmem>>, %arg7: memref<3x1x128xf32, #tpu.memory_space<vmem>>, %arg8: memref<2x16xf32, #tpu.memory_space<vmem>>, %arg9: memref<16x2xf32, #tpu.memory_space<vmem>>, %arg10: memref<256x128xf32, #tpu.memory_space<vmem>>, %arg11: memref<1x128xf32, #tpu.memory_space<vmem>>, %arg12: memref<2x128xf32, #tpu.memory_space<vmem>>) attributes {dimension_semantics = [], scalar_prefetch = 0 : i64, scratch_operands = 0 : i64, tpu.core_type = #tpu.core_type<tc>} {
    %c0 = arith.constant 0 : index
    %c0_0 = arith.constant 0 : index
    %0 = vector.load %arg0[%c0, %c0_0] : memref<16x128xf32, #tpu.memory_space<vmem>>, vector<16x128xf32>
    %c0_1 = arith.constant 0 : index
    %c0_2 = arith.constant 0 : index
    %1 = vector.load %arg1[%c0_1, %c0_2] : memref<16x16xbf16, #tpu.memory_space<vmem>>, vector<16x16xbf16>
    %2 = arith.extf %1 : vector<16x16xbf16> to vector<16x16xf32>
    %3 = arith.truncf %0 : vector<16x128xf32> to vector<16x128xbf16>
    %c0_3 = arith.constant 0 : index
    %c0_4 = arith.constant 0 : index
    %c0_5 = arith.constant 0 : index
    %4 = vector.load %arg2[%c0_3, %c0_4, %c0_5] : memref<3x128x128xbf16, #tpu.memory_space<vmem>>, vector<1x128x128xbf16>
    %5 = vector.shape_cast %4 : vector<1x128x128xbf16> to vector<128x128xbf16>
    %cst = arith.constant dense<0.000000e+00> : vector<16x128xf32>
    %6 = tpu.matmul %3, %5, %cst {dimension_numbers = #tpu.dot_dimension_numbers<[1], [0], [0], [1], [0, 0, 1, 1], [], []>} : vector<16x128xbf16>, vector<128x128xbf16>, vector<16x128xf32> -> vector<16x128xf32>
    %c0_6 = arith.constant 0 : index
    %c0_7 = arith.constant 0 : index
    %c0_8 = arith.constant 0 : index
    %7 = vector.load %arg4[%c0_6, %c0_7, %c0_8] : memref<3x128x4xf32, #tpu.memory_space<vmem>>, vector<1x128x4xf32>
    %8 = vector.shape_cast %7 : vector<1x128x4xf32> to vector<128x4xf32>
    %cst_9 = arith.constant dense<0.000000e+00> : vector<16x4xf32>
    %9 = tpu.matmul %6, %8, %cst_9 {dimension_numbers = #tpu.dot_dimension_numbers<[1], [0], [0], [1], [0, 0, 1, 1], [], []>} : vector<16x128xf32>, vector<128x4xf32>, vector<16x4xf32> -> vector<16x4xf32>
    %c0_10 = arith.constant 0 : index
    %c0_11 = arith.constant 0 : index
    %c0_12 = arith.constant 0 : index
    %10 = vector.load %arg3[%c0_10, %c0_11, %c0_12] : memref<3x4x128xf32, #tpu.memory_space<vmem>>, vector<1x4x128xf32>
    %11 = vector.shape_cast %10 : vector<1x4x128xf32> to vector<4x128xf32>
    %cst_13 = arith.constant dense<0.000000e+00> : vector<4x16xf32>
    %12 = tpu.matmul %11, %6, %cst_13 {dimension_numbers = #tpu.dot_dimension_numbers<[1], [1], [0], [0], [0, 0, 1, 0], [], []>} : vector<4x128xf32>, vector<16x128xf32>, vector<4x16xf32> -> vector<4x16xf32>
    %13 = vector.extract_strided_slice %9 {offsets = [0, 0], sizes = [16, 1], strides = [1, 1]} : vector<16x4xf32> to vector<16x1xf32>
    %14 = vector.extract_strided_slice %12 {offsets = [0, 0], sizes = [1, 16], strides = [1, 1]} : vector<4x16xf32> to vector<1x16xf32>
    %15 = vector.broadcast %13 : vector<16x1xf32> to vector<16x16xf32>
    %16 = vector.broadcast %14 : vector<1x16xf32> to vector<16x16xf32>
    %17 = arith.addf %15, %16 : vector<16x16xf32>
    %cst_14 = arith.constant 0.000000e+00 : f32
    %18 = vector.broadcast %cst_14 : f32 to vector<16x16xf32>
    %19 = arith.cmpf ogt, %17, %18 : vector<16x16xf32>
    %cst_15 = arith.constant 2.000000e-01 : f32
    %20 = vector.broadcast %cst_15 : f32 to vector<16x16xf32>
    %21 = arith.mulf %20, %17 : vector<16x16xf32>
    %22 = arith.select %19, %17, %21 : vector<16x16xi1>, vector<16x16xf32>
    %23 = arith.addf %22, %2 : vector<16x16xf32>
    %cst_16 = arith.constant dense<0xFF800000> : vector<16xf32>
    %24 = vector.multi_reduction <maximumf>, %23, %cst_16 [1] : vector<16x16xf32> to vector<16xf32>
    %25 = vector.shape_cast %24 : vector<16xf32> to vector<16x1xf32>
    %26 = vector.broadcast %25 : vector<16x1xf32> to vector<16x16xf32>
    %27 = arith.subf %23, %26 : vector<16x16xf32>
    %28 = math.exp %27 : vector<16x16xf32>
    %cst_17 = arith.constant dense<0.000000e+00> : vector<16xf32>
    %29 = vector.multi_reduction <add>, %28, %cst_17 [1] : vector<16x16xf32> to vector<16xf32>
    %30 = vector.shape_cast %29 : vector<16xf32> to vector<16x1xf32>
    %31 = vector.extract_strided_slice %6 {offsets = [0, 0], sizes = [16, 8], strides = [1, 1]} : vector<16x128xf32> to vector<16x8xf32>
    %32 = arith.truncf %28 : vector<16x16xf32> to vector<16x16xbf16>
    %33 = arith.truncf %31 : vector<16x8xf32> to vector<16x8xbf16>
    %cst_18 = arith.constant dense<0.000000e+00> : vector<16x8xf32>
    %34 = tpu.matmul %32, %33, %cst_18 {dimension_numbers = #tpu.dot_dimension_numbers<[1], [0], [0], [1], [0, 0, 1, 1], [], []>} : vector<16x16xbf16>, vector<16x8xbf16>, vector<16x8xf32> -> vector<16x8xf32>
    %35 = tpu.reciprocal %30 {approx = true} : vector<16x1xf32> -> vector<16x1xf32>
    %36 = vector.broadcast %35 : vector<16x1xf32> to vector<16x8xf32>
    %37 = arith.mulf %34, %36 : vector<16x8xf32>
    %38 = vector.extract_strided_slice %9 {offsets = [0, 1], sizes = [16, 1], strides = [1, 1]} : vector<16x4xf32> to vector<16x1xf32>
    %39 = vector.extract_strided_slice %12 {offsets = [1, 0], sizes = [1, 16], strides = [1, 1]} : vector<4x16xf32> to vector<1x16xf32>
    %40 = vector.broadcast %38 : vector<16x1xf32> to vector<16x16xf32>
    %41 = vector.broadcast %39 : vector<1x16xf32> to vector<16x16xf32>
    %42 = arith.addf %40, %41 : vector<16x16xf32>
    %cst_19 = arith.constant 0.000000e+00 : f32
    %43 = vector.broadcast %cst_19 : f32 to vector<16x16xf32>
    %44 = arith.cmpf ogt, %42, %43 : vector<16x16xf32>
    %cst_20 = arith.constant 2.000000e-01 : f32
    %45 = vector.broadcast %cst_20 : f32 to vector<16x16xf32>
    %46 = arith.mulf %45, %42 : vector<16x16xf32>
    %47 = arith.select %44, %42, %46 : vector<16x16xi1>, vector<16x16xf32>
    %48 = arith.addf %47, %2 : vector<16x16xf32>
    %cst_21 = arith.constant dense<0xFF800000> : vector<16xf32>
    %49 = vector.multi_reduction <maximumf>, %48, %cst_21 [1] : vector<16x16xf32> to vector<16xf32>
    %50 = vector.shape_cast %49 : vector<16xf32> to vector<16x1xf32>
    %51 = vector.broadcast %50 : vector<16x1xf32> to vector<16x16xf32>
    %52 = arith.subf %48, %51 : vector<16x16xf32>
    %53 = math.exp %52 : vector<16x16xf32>
    %cst_22 = arith.constant dense<0.000000e+00> : vector<16xf32>
    %54 = vector.multi_reduction <add>, %53, %cst_22 [1] : vector<16x16xf32> to vector<16xf32>
    %55 = vector.shape_cast %54 : vector<16xf32> to vector<16x1xf32>
    %56 = vector.extract_strided_slice %6 {offsets = [0, 8], sizes = [16, 8], strides = [1, 1]} : vector<16x128xf32> to vector<16x8xf32>
    %57 = arith.truncf %53 : vector<16x16xf32> to vector<16x16xbf16>
    %58 = arith.truncf %56 : vector<16x8xf32> to vector<16x8xbf16>
    %cst_23 = arith.constant dense<0.000000e+00> : vector<16x8xf32>
    %59 = tpu.matmul %57, %58, %cst_23 {dimension_numbers = #tpu.dot_dimension_numbers<[1], [0], [0], [1], [0, 0, 1, 1], [], []>} : vector<16x16xbf16>, vector<16x8xbf16>, vector<16x8xf32> -> vector<16x8xf32>
    %60 = tpu.reciprocal %55 {approx = true} : vector<16x1xf32> -> vector<16x1xf32>
    %61 = vector.broadcast %60 : vector<16x1xf32> to vector<16x8xf32>
    %62 = arith.mulf %59, %61 : vector<16x8xf32>
    %63 = vector.extract_strided_slice %9 {offsets = [0, 2], sizes = [16, 1], strides = [1, 1]} : vector<16x4xf32> to vector<16x1xf32>
    %64 = vector.extract_strided_slice %12 {offsets = [2, 0], sizes = [1, 16], strides = [1, 1]} : vector<4x16xf32> to vector<1x16xf32>
    %65 = vector.broadcast %63 : vector<16x1xf32> to vector<16x16xf32>
    %66 = vector.broadcast %64 : vector<1x16xf32> to vector<16x16xf32>
    %67 = arith.addf %65, %66 : vector<16x16xf32>
    %cst_24 = arith.constant 0.000000e+00 : f32
    %68 = vector.broadcast %cst_24 : f32 to vector<16x16xf32>
    %69 = arith.cmpf ogt, %67, %68 : vector<16x16xf32>
    %cst_25 = arith.constant 2.000000e-01 : f32
    %70 = vector.broadcast %cst_25 : f32 to vector<16x16xf32>
    %71 = arith.mulf %70, %67 : vector<16x16xf32>
    %72 = arith.select %69, %67, %71 : vector<16x16xi1>, vector<16x16xf32>
    %73 = arith.addf %72, %2 : vector<16x16xf32>
    %cst_26 = arith.constant dense<0xFF800000> : vector<16xf32>
    %74 = vector.multi_reduction <maximumf>, %73, %cst_26 [1] : vector<16x16xf32> to vector<16xf32>
    %75 = vector.shape_cast %74 : vector<16xf32> to vector<16x1xf32>
    %76 = vector.broadcast %75 : vector<16x1xf32> to vector<16x16xf32>
    %77 = arith.subf %73, %76 : vector<16x16xf32>
    %78 = math.exp %77 : vector<16x16xf32>
    %cst_27 = arith.constant dense<0.000000e+00> : vector<16xf32>
    %79 = vector.multi_reduction <add>, %78, %cst_27 [1] : vector<16x16xf32> to vector<16xf32>
    %80 = vector.shape_cast %79 : vector<16xf32> to vector<16x1xf32>
    %81 = vector.extract_strided_slice %6 {offsets = [0, 16], sizes = [16, 8], strides = [1, 1]} : vector<16x128xf32> to vector<16x8xf32>
    %82 = arith.truncf %78 : vector<16x16xf32> to vector<16x16xbf16>
    %83 = arith.truncf %81 : vector<16x8xf32> to vector<16x8xbf16>
    %cst_28 = arith.constant dense<0.000000e+00> : vector<16x8xf32>
    %84 = tpu.matmul %82, %83, %cst_28 {dimension_numbers = #tpu.dot_dimension_numbers<[1], [0], [0], [1], [0, 0, 1, 1], [], []>} : vector<16x16xbf16>, vector<16x8xbf16>, vector<16x8xf32> -> vector<16x8xf32>
    %85 = tpu.reciprocal %80 {approx = true} : vector<16x1xf32> -> vector<16x1xf32>
    %86 = vector.broadcast %85 : vector<16x1xf32> to vector<16x8xf32>
    %87 = arith.mulf %84, %86 : vector<16x8xf32>
    %88 = vector.extract_strided_slice %9 {offsets = [0, 3], sizes = [16, 1], strides = [1, 1]} : vector<16x4xf32> to vector<16x1xf32>
    %89 = vector.extract_strided_slice %12 {offsets = [3, 0], sizes = [1, 16], strides = [1, 1]} : vector<4x16xf32> to vector<1x16xf32>
    %90 = vector.broadcast %88 : vector<16x1xf32> to vector<16x16xf32>
    %91 = vector.broadcast %89 : vector<1x16xf32> to vector<16x16xf32>
    %92 = arith.addf %90, %91 : vector<16x16xf32>
    %cst_29 = arith.constant 0.000000e+00 : f32
    %93 = vector.broadcast %cst_29 : f32 to vector<16x16xf32>
    %94 = arith.cmpf ogt, %92, %93 : vector<16x16xf32>
    %cst_30 = arith.constant 2.000000e-01 : f32
    %95 = vector.broadcast %cst_30 : f32 to vector<16x16xf32>
    %96 = arith.mulf %95, %92 : vector<16x16xf32>
    %97 = arith.select %94, %92, %96 : vector<16x16xi1>, vector<16x16xf32>
    %98 = arith.addf %97, %2 : vector<16x16xf32>
    %cst_31 = arith.constant dense<0xFF800000> : vector<16xf32>
    %99 = vector.multi_reduction <maximumf>, %98, %cst_31 [1] : vector<16x16xf32> to vector<16xf32>
    %100 = vector.shape_cast %99 : vector<16xf32> to vector<16x1xf32>
    %101 = vector.broadcast %100 : vector<16x1xf32> to vector<16x16xf32>
    %102 = arith.subf %98, %101 : vector<16x16xf32>
    %103 = math.exp %102 : vector<16x16xf32>
    %cst_32 = arith.constant dense<0.000000e+00> : vector<16xf32>
    %104 = vector.multi_reduction <add>, %103, %cst_32 [1] : vector<16x16xf32> to vector<16xf32>
    %105 = vector.shape_cast %104 : vector<16xf32> to vector<16x1xf32>
    %106 = vector.extract_strided_slice %6 {offsets = [0, 24], sizes = [16, 8], strides = [1, 1]} : vector<16x128xf32> to vector<16x8xf32>
    %107 = arith.truncf %103 : vector<16x16xf32> to vector<16x16xbf16>
    %108 = arith.truncf %106 : vector<16x8xf32> to vector<16x8xbf16>
    %cst_33 = arith.constant dense<0.000000e+00> : vector<16x8xf32>
    %109 = tpu.matmul %107, %108, %cst_33 {dimension_numbers = #tpu.dot_dimension_numbers<[1], [0], [0], [1], [0, 0, 1, 1], [], []>} : vector<16x16xbf16>, vector<16x8xbf16>, vector<16x8xf32> -> vector<16x8xf32>
    %110 = tpu.reciprocal %105 {approx = true} : vector<16x1xf32> -> vector<16x1xf32>
    %111 = vector.broadcast %110 : vector<16x1xf32> to vector<16x8xf32>
    %112 = arith.mulf %109, %111 : vector<16x8xf32>
    %cst_34 = arith.constant 0.000000e+00 : f32
    %113 = vector.broadcast %cst_34 : f32 to vector<16x96xf32>
    %114 = tpu.concatenate %37, %62, %87, %112, %113 in 1 : vector<16x8xf32>, vector<16x8xf32>, vector<16x8xf32>, vector<16x8xf32>, vector<16x96xf32> -> vector<16x128xf32>
    %c0_35 = arith.constant 0 : index
    %c0_36 = arith.constant 0 : index
    %c0_37 = arith.constant 0 : index
    %115 = vector.load %arg5[%c0_35, %c0_36, %c0_37] : memref<3x1x128xf32, #tpu.memory_space<vmem>>, vector<1x1x128xf32>
    %116 = vector.shape_cast %115 : vector<1x1x128xf32> to vector<1x128xf32>
    %117 = vector.broadcast %116 : vector<1x128xf32> to vector<16x128xf32>
    %118 = arith.addf %114, %117 : vector<16x128xf32>
    %cst_38 = arith.constant dense<0.000000e+00> : vector<16xf32>
    %119 = vector.multi_reduction <add>, %118, %cst_38 [1] : vector<16x128xf32> to vector<16xf32>
    %120 = vector.shape_cast %119 : vector<16xf32> to vector<16x1xf32>
    %cst_39 = arith.constant 3.125000e-02 : f32
    %121 = vector.broadcast %cst_39 : f32 to vector<16x1xf32>
    %122 = arith.mulf %120, %121 : vector<16x1xf32>
    %123 = arith.mulf %118, %118 : vector<16x128xf32>
    %cst_40 = arith.constant dense<0.000000e+00> : vector<16xf32>
    %124 = vector.multi_reduction <add>, %123, %cst_40 [1] : vector<16x128xf32> to vector<16xf32>
    %125 = vector.shape_cast %124 : vector<16xf32> to vector<16x1xf32>
    %cst_41 = arith.constant 3.125000e-02 : f32
    %126 = vector.broadcast %cst_41 : f32 to vector<16x1xf32>
    %127 = arith.mulf %125, %126 : vector<16x1xf32>
    %128 = arith.mulf %122, %122 : vector<16x1xf32>
    %129 = arith.subf %127, %128 : vector<16x1xf32>
    %130 = vector.broadcast %122 : vector<16x1xf32> to vector<16x128xf32>
    %131 = arith.subf %118, %130 : vector<16x128xf32>
    %cst_42 = arith.constant 9.99999974E-6 : f32
    %132 = vector.broadcast %cst_42 : f32 to vector<16x1xf32>
    %133 = arith.addf %129, %132 : vector<16x1xf32>
    %134 = math.rsqrt %133 : vector<16x1xf32>
    %135 = vector.broadcast %134 : vector<16x1xf32> to vector<16x128xf32>
    %136 = arith.mulf %131, %135 : vector<16x128xf32>
    %c0_43 = arith.constant 0 : index
    %c0_44 = arith.constant 0 : index
    %c0_45 = arith.constant 0 : index
    %137 = vector.load %arg6[%c0_43, %c0_44, %c0_45] : memref<3x1x128xf32, #tpu.memory_space<vmem>>, vector<1x1x128xf32>
    %138 = vector.shape_cast %137 : vector<1x1x128xf32> to vector<1x128xf32>
    %139 = vector.broadcast %138 : vector<1x128xf32> to vector<16x128xf32>
    %140 = arith.mulf %136, %139 : vector<16x128xf32>
    %c0_46 = arith.constant 0 : index
    %c0_47 = arith.constant 0 : index
    %c0_48 = arith.constant 0 : index
    %141 = vector.load %arg7[%c0_46, %c0_47, %c0_48] : memref<3x1x128xf32, #tpu.memory_space<vmem>>, vector<1x1x128xf32>
    %142 = vector.shape_cast %141 : vector<1x1x128xf32> to vector<1x128xf32>
    %143 = vector.broadcast %142 : vector<1x128xf32> to vector<16x128xf32>
    %144 = arith.addf %140, %143 : vector<16x128xf32>
    %cst_49 = arith.constant 0.000000e+00 : f32
    %145 = vector.broadcast %cst_49 : f32 to vector<16x128xf32>
    %146 = arith.cmpf ogt, %144, %145 : vector<16x128xf32>
    %cst_50 = arith.constant 1.000000e-01 : f32
    %147 = vector.broadcast %cst_50 : f32 to vector<16x128xf32>
    %148 = arith.mulf %147, %144 : vector<16x128xf32>
    %149 = arith.select %146, %144, %148 : vector<16x128xi1>, vector<16x128xf32>
    %150 = arith.truncf %149 : vector<16x128xf32> to vector<16x128xbf16>
    %c1 = arith.constant 1 : index
    %c0_51 = arith.constant 0 : index
    %c0_52 = arith.constant 0 : index
    %151 = vector.load %arg2[%c1, %c0_51, %c0_52] : memref<3x128x128xbf16, #tpu.memory_space<vmem>>, vector<1x128x128xbf16>
    %152 = vector.shape_cast %151 : vector<1x128x128xbf16> to vector<128x128xbf16>
    %cst_53 = arith.constant dense<0.000000e+00> : vector<16x128xf32>
    %153 = tpu.matmul %150, %152, %cst_53 {dimension_numbers = #tpu.dot_dimension_numbers<[1], [0], [0], [1], [0, 0, 1, 1], [], []>} : vector<16x128xbf16>, vector<128x128xbf16>, vector<16x128xf32> -> vector<16x128xf32>
    %c1_54 = arith.constant 1 : index
    %c0_55 = arith.constant 0 : index
    %c0_56 = arith.constant 0 : index
    %154 = vector.load %arg4[%c1_54, %c0_55, %c0_56] : memref<3x128x4xf32, #tpu.memory_space<vmem>>, vector<1x128x4xf32>
    %155 = vector.shape_cast %154 : vector<1x128x4xf32> to vector<128x4xf32>
    %cst_57 = arith.constant dense<0.000000e+00> : vector<16x4xf32>
    %156 = tpu.matmul %153, %155, %cst_57 {dimension_numbers = #tpu.dot_dimension_numbers<[1], [0], [0], [1], [0, 0, 1, 1], [], []>} : vector<16x128xf32>, vector<128x4xf32>, vector<16x4xf32> -> vector<16x4xf32>
    %c1_58 = arith.constant 1 : index
    %c0_59 = arith.constant 0 : index
    %c0_60 = arith.constant 0 : index
    %157 = vector.load %arg3[%c1_58, %c0_59, %c0_60] : memref<3x4x128xf32, #tpu.memory_space<vmem>>, vector<1x4x128xf32>
    %158 = vector.shape_cast %157 : vector<1x4x128xf32> to vector<4x128xf32>
    %cst_61 = arith.constant dense<0.000000e+00> : vector<4x16xf32>
    %159 = tpu.matmul %158, %153, %cst_61 {dimension_numbers = #tpu.dot_dimension_numbers<[1], [1], [0], [0], [0, 0, 1, 0], [], []>} : vector<4x128xf32>, vector<16x128xf32>, vector<4x16xf32> -> vector<4x16xf32>
    %160 = vector.extract_strided_slice %156 {offsets = [0, 0], sizes = [16, 1], strides = [1, 1]} : vector<16x4xf32> to vector<16x1xf32>
    %161 = vector.extract_strided_slice %159 {offsets = [0, 0], sizes = [1, 16], strides = [1, 1]} : vector<4x16xf32> to vector<1x16xf32>
    %162 = vector.broadcast %160 : vector<16x1xf32> to vector<16x16xf32>
    %163 = vector.broadcast %161 : vector<1x16xf32> to vector<16x16xf32>
    %164 = arith.addf %162, %163 : vector<16x16xf32>
    %cst_62 = arith.constant 0.000000e+00 : f32
    %165 = vector.broadcast %cst_62 : f32 to vector<16x16xf32>
    %166 = arith.cmpf ogt, %164, %165 : vector<16x16xf32>
    %cst_63 = arith.constant 2.000000e-01 : f32
    %167 = vector.broadcast %cst_63 : f32 to vector<16x16xf32>
    %168 = arith.mulf %167, %164 : vector<16x16xf32>
    %169 = arith.select %166, %164, %168 : vector<16x16xi1>, vector<16x16xf32>
    %170 = arith.addf %169, %2 : vector<16x16xf32>
    %cst_64 = arith.constant dense<0xFF800000> : vector<16xf32>
    %171 = vector.multi_reduction <maximumf>, %170, %cst_64 [1] : vector<16x16xf32> to vector<16xf32>
    %172 = vector.shape_cast %171 : vector<16xf32> to vector<16x1xf32>
    %173 = vector.broadcast %172 : vector<16x1xf32> to vector<16x16xf32>
    %174 = arith.subf %170, %173 : vector<16x16xf32>
    %175 = math.exp %174 : vector<16x16xf32>
    %cst_65 = arith.constant dense<0.000000e+00> : vector<16xf32>
    %176 = vector.multi_reduction <add>, %175, %cst_65 [1] : vector<16x16xf32> to vector<16xf32>
    %177 = vector.shape_cast %176 : vector<16xf32> to vector<16x1xf32>
    %178 = vector.extract_strided_slice %153 {offsets = [0, 0], sizes = [16, 8], strides = [1, 1]} : vector<16x128xf32> to vector<16x8xf32>
    %179 = arith.truncf %175 : vector<16x16xf32> to vector<16x16xbf16>
    %180 = arith.truncf %178 : vector<16x8xf32> to vector<16x8xbf16>
    %cst_66 = arith.constant dense<0.000000e+00> : vector<16x8xf32>
    %181 = tpu.matmul %179, %180, %cst_66 {dimension_numbers = #tpu.dot_dimension_numbers<[1], [0], [0], [1], [0, 0, 1, 1], [], []>} : vector<16x16xbf16>, vector<16x8xbf16>, vector<16x8xf32> -> vector<16x8xf32>
    %182 = tpu.reciprocal %177 {approx = true} : vector<16x1xf32> -> vector<16x1xf32>
    %183 = vector.broadcast %182 : vector<16x1xf32> to vector<16x8xf32>
    %184 = arith.mulf %181, %183 : vector<16x8xf32>
    %185 = vector.extract_strided_slice %156 {offsets = [0, 1], sizes = [16, 1], strides = [1, 1]} : vector<16x4xf32> to vector<16x1xf32>
    %186 = vector.extract_strided_slice %159 {offsets = [1, 0], sizes = [1, 16], strides = [1, 1]} : vector<4x16xf32> to vector<1x16xf32>
    %187 = vector.broadcast %185 : vector<16x1xf32> to vector<16x16xf32>
    %188 = vector.broadcast %186 : vector<1x16xf32> to vector<16x16xf32>
    %189 = arith.addf %187, %188 : vector<16x16xf32>
    %cst_67 = arith.constant 0.000000e+00 : f32
    %190 = vector.broadcast %cst_67 : f32 to vector<16x16xf32>
    %191 = arith.cmpf ogt, %189, %190 : vector<16x16xf32>
    %cst_68 = arith.constant 2.000000e-01 : f32
    %192 = vector.broadcast %cst_68 : f32 to vector<16x16xf32>
    %193 = arith.mulf %192, %189 : vector<16x16xf32>
    %194 = arith.select %191, %189, %193 : vector<16x16xi1>, vector<16x16xf32>
    %195 = arith.addf %194, %2 : vector<16x16xf32>
    %cst_69 = arith.constant dense<0xFF800000> : vector<16xf32>
    %196 = vector.multi_reduction <maximumf>, %195, %cst_69 [1] : vector<16x16xf32> to vector<16xf32>
    %197 = vector.shape_cast %196 : vector<16xf32> to vector<16x1xf32>
    %198 = vector.broadcast %197 : vector<16x1xf32> to vector<16x16xf32>
    %199 = arith.subf %195, %198 : vector<16x16xf32>
    %200 = math.exp %199 : vector<16x16xf32>
    %cst_70 = arith.constant dense<0.000000e+00> : vector<16xf32>
    %201 = vector.multi_reduction <add>, %200, %cst_70 [1] : vector<16x16xf32> to vector<16xf32>
    %202 = vector.shape_cast %201 : vector<16xf32> to vector<16x1xf32>
    %203 = vector.extract_strided_slice %153 {offsets = [0, 8], sizes = [16, 8], strides = [1, 1]} : vector<16x128xf32> to vector<16x8xf32>
    %204 = arith.truncf %200 : vector<16x16xf32> to vector<16x16xbf16>
    %205 = arith.truncf %203 : vector<16x8xf32> to vector<16x8xbf16>
    %cst_71 = arith.constant dense<0.000000e+00> : vector<16x8xf32>
    %206 = tpu.matmul %204, %205, %cst_71 {dimension_numbers = #tpu.dot_dimension_numbers<[1], [0], [0], [1], [0, 0, 1, 1], [], []>} : vector<16x16xbf16>, vector<16x8xbf16>, vector<16x8xf32> -> vector<16x8xf32>
    %207 = tpu.reciprocal %202 {approx = true} : vector<16x1xf32> -> vector<16x1xf32>
    %208 = vector.broadcast %207 : vector<16x1xf32> to vector<16x8xf32>
    %209 = arith.mulf %206, %208 : vector<16x8xf32>
    %210 = vector.extract_strided_slice %156 {offsets = [0, 2], sizes = [16, 1], strides = [1, 1]} : vector<16x4xf32> to vector<16x1xf32>
    %211 = vector.extract_strided_slice %159 {offsets = [2, 0], sizes = [1, 16], strides = [1, 1]} : vector<4x16xf32> to vector<1x16xf32>
    %212 = vector.broadcast %210 : vector<16x1xf32> to vector<16x16xf32>
    %213 = vector.broadcast %211 : vector<1x16xf32> to vector<16x16xf32>
    %214 = arith.addf %212, %213 : vector<16x16xf32>
    %cst_72 = arith.constant 0.000000e+00 : f32
    %215 = vector.broadcast %cst_72 : f32 to vector<16x16xf32>
    %216 = arith.cmpf ogt, %214, %215 : vector<16x16xf32>
    %cst_73 = arith.constant 2.000000e-01 : f32
    %217 = vector.broadcast %cst_73 : f32 to vector<16x16xf32>
    %218 = arith.mulf %217, %214 : vector<16x16xf32>
    %219 = arith.select %216, %214, %218 : vector<16x16xi1>, vector<16x16xf32>
    %220 = arith.addf %219, %2 : vector<16x16xf32>
    %cst_74 = arith.constant dense<0xFF800000> : vector<16xf32>
    %221 = vector.multi_reduction <maximumf>, %220, %cst_74 [1] : vector<16x16xf32> to vector<16xf32>
    %222 = vector.shape_cast %221 : vector<16xf32> to vector<16x1xf32>
    %223 = vector.broadcast %222 : vector<16x1xf32> to vector<16x16xf32>
    %224 = arith.subf %220, %223 : vector<16x16xf32>
    %225 = math.exp %224 : vector<16x16xf32>
    %cst_75 = arith.constant dense<0.000000e+00> : vector<16xf32>
    %226 = vector.multi_reduction <add>, %225, %cst_75 [1] : vector<16x16xf32> to vector<16xf32>
    %227 = vector.shape_cast %226 : vector<16xf32> to vector<16x1xf32>
    %228 = vector.extract_strided_slice %153 {offsets = [0, 16], sizes = [16, 8], strides = [1, 1]} : vector<16x128xf32> to vector<16x8xf32>
    %229 = arith.truncf %225 : vector<16x16xf32> to vector<16x16xbf16>
    %230 = arith.truncf %228 : vector<16x8xf32> to vector<16x8xbf16>
    %cst_76 = arith.constant dense<0.000000e+00> : vector<16x8xf32>
    %231 = tpu.matmul %229, %230, %cst_76 {dimension_numbers = #tpu.dot_dimension_numbers<[1], [0], [0], [1], [0, 0, 1, 1], [], []>} : vector<16x16xbf16>, vector<16x8xbf16>, vector<16x8xf32> -> vector<16x8xf32>
    %232 = tpu.reciprocal %227 {approx = true} : vector<16x1xf32> -> vector<16x1xf32>
    %233 = vector.broadcast %232 : vector<16x1xf32> to vector<16x8xf32>
    %234 = arith.mulf %231, %233 : vector<16x8xf32>
    %235 = vector.extract_strided_slice %156 {offsets = [0, 3], sizes = [16, 1], strides = [1, 1]} : vector<16x4xf32> to vector<16x1xf32>
    %236 = vector.extract_strided_slice %159 {offsets = [3, 0], sizes = [1, 16], strides = [1, 1]} : vector<4x16xf32> to vector<1x16xf32>
    %237 = vector.broadcast %235 : vector<16x1xf32> to vector<16x16xf32>
    %238 = vector.broadcast %236 : vector<1x16xf32> to vector<16x16xf32>
    %239 = arith.addf %237, %238 : vector<16x16xf32>
    %cst_77 = arith.constant 0.000000e+00 : f32
    %240 = vector.broadcast %cst_77 : f32 to vector<16x16xf32>
    %241 = arith.cmpf ogt, %239, %240 : vector<16x16xf32>
    %cst_78 = arith.constant 2.000000e-01 : f32
    %242 = vector.broadcast %cst_78 : f32 to vector<16x16xf32>
    %243 = arith.mulf %242, %239 : vector<16x16xf32>
    %244 = arith.select %241, %239, %243 : vector<16x16xi1>, vector<16x16xf32>
    %245 = arith.addf %244, %2 : vector<16x16xf32>
    %cst_79 = arith.constant dense<0xFF800000> : vector<16xf32>
    %246 = vector.multi_reduction <maximumf>, %245, %cst_79 [1] : vector<16x16xf32> to vector<16xf32>
    %247 = vector.shape_cast %246 : vector<16xf32> to vector<16x1xf32>
    %248 = vector.broadcast %247 : vector<16x1xf32> to vector<16x16xf32>
    %249 = arith.subf %245, %248 : vector<16x16xf32>
    %250 = math.exp %249 : vector<16x16xf32>
    %cst_80 = arith.constant dense<0.000000e+00> : vector<16xf32>
    %251 = vector.multi_reduction <add>, %250, %cst_80 [1] : vector<16x16xf32> to vector<16xf32>
    %252 = vector.shape_cast %251 : vector<16xf32> to vector<16x1xf32>
    %253 = vector.extract_strided_slice %153 {offsets = [0, 24], sizes = [16, 8], strides = [1, 1]} : vector<16x128xf32> to vector<16x8xf32>
    %254 = arith.truncf %250 : vector<16x16xf32> to vector<16x16xbf16>
    %255 = arith.truncf %253 : vector<16x8xf32> to vector<16x8xbf16>
    %cst_81 = arith.constant dense<0.000000e+00> : vector<16x8xf32>
    %256 = tpu.matmul %254, %255, %cst_81 {dimension_numbers = #tpu.dot_dimension_numbers<[1], [0], [0], [1], [0, 0, 1, 1], [], []>} : vector<16x16xbf16>, vector<16x8xbf16>, vector<16x8xf32> -> vector<16x8xf32>
    %257 = tpu.reciprocal %252 {approx = true} : vector<16x1xf32> -> vector<16x1xf32>
    %258 = vector.broadcast %257 : vector<16x1xf32> to vector<16x8xf32>
    %259 = arith.mulf %256, %258 : vector<16x8xf32>
    %cst_82 = arith.constant 0.000000e+00 : f32
    %260 = vector.broadcast %cst_82 : f32 to vector<16x96xf32>
    %261 = tpu.concatenate %184, %209, %234, %259, %260 in 1 : vector<16x8xf32>, vector<16x8xf32>, vector<16x8xf32>, vector<16x8xf32>, vector<16x96xf32> -> vector<16x128xf32>
    %c1_83 = arith.constant 1 : index
    %c0_84 = arith.constant 0 : index
    %c0_85 = arith.constant 0 : index
    %262 = vector.load %arg5[%c1_83, %c0_84, %c0_85] : memref<3x1x128xf32, #tpu.memory_space<vmem>>, vector<1x1x128xf32>
    %263 = vector.shape_cast %262 : vector<1x1x128xf32> to vector<1x128xf32>
    %264 = vector.broadcast %263 : vector<1x128xf32> to vector<16x128xf32>
    %265 = arith.addf %261, %264 : vector<16x128xf32>
    %cst_86 = arith.constant dense<0.000000e+00> : vector<16xf32>
    %266 = vector.multi_reduction <add>, %265, %cst_86 [1] : vector<16x128xf32> to vector<16xf32>
    %267 = vector.shape_cast %266 : vector<16xf32> to vector<16x1xf32>
    %cst_87 = arith.constant 3.125000e-02 : f32
    %268 = vector.broadcast %cst_87 : f32 to vector<16x1xf32>
    %269 = arith.mulf %267, %268 : vector<16x1xf32>
    %270 = arith.mulf %265, %265 : vector<16x128xf32>
    %cst_88 = arith.constant dense<0.000000e+00> : vector<16xf32>
    %271 = vector.multi_reduction <add>, %270, %cst_88 [1] : vector<16x128xf32> to vector<16xf32>
    %272 = vector.shape_cast %271 : vector<16xf32> to vector<16x1xf32>
    %cst_89 = arith.constant 3.125000e-02 : f32
    %273 = vector.broadcast %cst_89 : f32 to vector<16x1xf32>
    %274 = arith.mulf %272, %273 : vector<16x1xf32>
    %275 = arith.mulf %269, %269 : vector<16x1xf32>
    %276 = arith.subf %274, %275 : vector<16x1xf32>
    %277 = vector.broadcast %269 : vector<16x1xf32> to vector<16x128xf32>
    %278 = arith.subf %265, %277 : vector<16x128xf32>
    %cst_90 = arith.constant 9.99999974E-6 : f32
    %279 = vector.broadcast %cst_90 : f32 to vector<16x1xf32>
    %280 = arith.addf %276, %279 : vector<16x1xf32>
    %281 = math.rsqrt %280 : vector<16x1xf32>
    %282 = vector.broadcast %281 : vector<16x1xf32> to vector<16x128xf32>
    %283 = arith.mulf %278, %282 : vector<16x128xf32>
    %c1_91 = arith.constant 1 : index
    %c0_92 = arith.constant 0 : index
    %c0_93 = arith.constant 0 : index
    %284 = vector.load %arg6[%c1_91, %c0_92, %c0_93] : memref<3x1x128xf32, #tpu.memory_space<vmem>>, vector<1x1x128xf32>
    %285 = vector.shape_cast %284 : vector<1x1x128xf32> to vector<1x128xf32>
    %286 = vector.broadcast %285 : vector<1x128xf32> to vector<16x128xf32>
    %287 = arith.mulf %283, %286 : vector<16x128xf32>
    %c1_94 = arith.constant 1 : index
    %c0_95 = arith.constant 0 : index
    %c0_96 = arith.constant 0 : index
    %288 = vector.load %arg7[%c1_94, %c0_95, %c0_96] : memref<3x1x128xf32, #tpu.memory_space<vmem>>, vector<1x1x128xf32>
    %289 = vector.shape_cast %288 : vector<1x1x128xf32> to vector<1x128xf32>
    %290 = vector.broadcast %289 : vector<1x128xf32> to vector<16x128xf32>
    %291 = arith.addf %287, %290 : vector<16x128xf32>
    %cst_97 = arith.constant 0.000000e+00 : f32
    %292 = vector.broadcast %cst_97 : f32 to vector<16x128xf32>
    %293 = arith.cmpf ogt, %291, %292 : vector<16x128xf32>
    %cst_98 = arith.constant 1.000000e-01 : f32
    %294 = vector.broadcast %cst_98 : f32 to vector<16x128xf32>
    %295 = arith.mulf %294, %291 : vector<16x128xf32>
    %296 = arith.select %293, %291, %295 : vector<16x128xi1>, vector<16x128xf32>
    %297 = arith.truncf %296 : vector<16x128xf32> to vector<16x128xbf16>
    %c2 = arith.constant 2 : index
    %c0_99 = arith.constant 0 : index
    %c0_100 = arith.constant 0 : index
    %298 = vector.load %arg2[%c2, %c0_99, %c0_100] : memref<3x128x128xbf16, #tpu.memory_space<vmem>>, vector<1x128x128xbf16>
    %299 = vector.shape_cast %298 : vector<1x128x128xbf16> to vector<128x128xbf16>
    %cst_101 = arith.constant dense<0.000000e+00> : vector<16x128xf32>
    %300 = tpu.matmul %297, %299, %cst_101 {dimension_numbers = #tpu.dot_dimension_numbers<[1], [0], [0], [1], [0, 0, 1, 1], [], []>} : vector<16x128xbf16>, vector<128x128xbf16>, vector<16x128xf32> -> vector<16x128xf32>
    %c2_102 = arith.constant 2 : index
    %c0_103 = arith.constant 0 : index
    %c0_104 = arith.constant 0 : index
    %301 = vector.load %arg4[%c2_102, %c0_103, %c0_104] : memref<3x128x4xf32, #tpu.memory_space<vmem>>, vector<1x128x4xf32>
    %302 = vector.shape_cast %301 : vector<1x128x4xf32> to vector<128x4xf32>
    %cst_105 = arith.constant dense<0.000000e+00> : vector<16x4xf32>
    %303 = tpu.matmul %300, %302, %cst_105 {dimension_numbers = #tpu.dot_dimension_numbers<[1], [0], [0], [1], [0, 0, 1, 1], [], []>} : vector<16x128xf32>, vector<128x4xf32>, vector<16x4xf32> -> vector<16x4xf32>
    %c2_106 = arith.constant 2 : index
    %c0_107 = arith.constant 0 : index
    %c0_108 = arith.constant 0 : index
    %304 = vector.load %arg3[%c2_106, %c0_107, %c0_108] : memref<3x4x128xf32, #tpu.memory_space<vmem>>, vector<1x4x128xf32>
    %305 = vector.shape_cast %304 : vector<1x4x128xf32> to vector<4x128xf32>
    %cst_109 = arith.constant dense<0.000000e+00> : vector<4x16xf32>
    %306 = tpu.matmul %305, %300, %cst_109 {dimension_numbers = #tpu.dot_dimension_numbers<[1], [1], [0], [0], [0, 0, 1, 0], [], []>} : vector<4x128xf32>, vector<16x128xf32>, vector<4x16xf32> -> vector<4x16xf32>
    %307 = vector.extract_strided_slice %303 {offsets = [0, 0], sizes = [16, 1], strides = [1, 1]} : vector<16x4xf32> to vector<16x1xf32>
    %308 = vector.extract_strided_slice %306 {offsets = [0, 0], sizes = [1, 16], strides = [1, 1]} : vector<4x16xf32> to vector<1x16xf32>
    %309 = vector.broadcast %307 : vector<16x1xf32> to vector<16x16xf32>
    %310 = vector.broadcast %308 : vector<1x16xf32> to vector<16x16xf32>
    %311 = arith.addf %309, %310 : vector<16x16xf32>
    %cst_110 = arith.constant 0.000000e+00 : f32
    %312 = vector.broadcast %cst_110 : f32 to vector<16x16xf32>
    %313 = arith.cmpf ogt, %311, %312 : vector<16x16xf32>
    %cst_111 = arith.constant 2.000000e-01 : f32
    %314 = vector.broadcast %cst_111 : f32 to vector<16x16xf32>
    %315 = arith.mulf %314, %311 : vector<16x16xf32>
    %316 = arith.select %313, %311, %315 : vector<16x16xi1>, vector<16x16xf32>
    %317 = arith.addf %316, %2 : vector<16x16xf32>
    %cst_112 = arith.constant dense<0xFF800000> : vector<16xf32>
    %318 = vector.multi_reduction <maximumf>, %317, %cst_112 [1] : vector<16x16xf32> to vector<16xf32>
    %319 = vector.shape_cast %318 : vector<16xf32> to vector<16x1xf32>
    %320 = vector.broadcast %319 : vector<16x1xf32> to vector<16x16xf32>
    %321 = arith.subf %317, %320 : vector<16x16xf32>
    %322 = math.exp %321 : vector<16x16xf32>
    %cst_113 = arith.constant dense<0.000000e+00> : vector<16xf32>
    %323 = vector.multi_reduction <add>, %322, %cst_113 [1] : vector<16x16xf32> to vector<16xf32>
    %324 = vector.shape_cast %323 : vector<16xf32> to vector<16x1xf32>
    %325 = vector.extract_strided_slice %300 {offsets = [0, 0], sizes = [16, 8], strides = [1, 1]} : vector<16x128xf32> to vector<16x8xf32>
    %326 = arith.truncf %322 : vector<16x16xf32> to vector<16x16xbf16>
    %327 = arith.truncf %325 : vector<16x8xf32> to vector<16x8xbf16>
    %cst_114 = arith.constant dense<0.000000e+00> : vector<16x8xf32>
    %328 = tpu.matmul %326, %327, %cst_114 {dimension_numbers = #tpu.dot_dimension_numbers<[1], [0], [0], [1], [0, 0, 1, 1], [], []>} : vector<16x16xbf16>, vector<16x8xbf16>, vector<16x8xf32> -> vector<16x8xf32>
    %329 = tpu.reciprocal %324 {approx = true} : vector<16x1xf32> -> vector<16x1xf32>
    %330 = vector.broadcast %329 : vector<16x1xf32> to vector<16x8xf32>
    %331 = arith.mulf %328, %330 : vector<16x8xf32>
    %332 = vector.extract_strided_slice %303 {offsets = [0, 1], sizes = [16, 1], strides = [1, 1]} : vector<16x4xf32> to vector<16x1xf32>
    %333 = vector.extract_strided_slice %306 {offsets = [1, 0], sizes = [1, 16], strides = [1, 1]} : vector<4x16xf32> to vector<1x16xf32>
    %334 = vector.broadcast %332 : vector<16x1xf32> to vector<16x16xf32>
    %335 = vector.broadcast %333 : vector<1x16xf32> to vector<16x16xf32>
    %336 = arith.addf %334, %335 : vector<16x16xf32>
    %cst_115 = arith.constant 0.000000e+00 : f32
    %337 = vector.broadcast %cst_115 : f32 to vector<16x16xf32>
    %338 = arith.cmpf ogt, %336, %337 : vector<16x16xf32>
    %cst_116 = arith.constant 2.000000e-01 : f32
    %339 = vector.broadcast %cst_116 : f32 to vector<16x16xf32>
    %340 = arith.mulf %339, %336 : vector<16x16xf32>
    %341 = arith.select %338, %336, %340 : vector<16x16xi1>, vector<16x16xf32>
    %342 = arith.addf %341, %2 : vector<16x16xf32>
    %cst_117 = arith.constant dense<0xFF800000> : vector<16xf32>
    %343 = vector.multi_reduction <maximumf>, %342, %cst_117 [1] : vector<16x16xf32> to vector<16xf32>
    %344 = vector.shape_cast %343 : vector<16xf32> to vector<16x1xf32>
    %345 = vector.broadcast %344 : vector<16x1xf32> to vector<16x16xf32>
    %346 = arith.subf %342, %345 : vector<16x16xf32>
    %347 = math.exp %346 : vector<16x16xf32>
    %cst_118 = arith.constant dense<0.000000e+00> : vector<16xf32>
    %348 = vector.multi_reduction <add>, %347, %cst_118 [1] : vector<16x16xf32> to vector<16xf32>
    %349 = vector.shape_cast %348 : vector<16xf32> to vector<16x1xf32>
    %350 = vector.extract_strided_slice %300 {offsets = [0, 8], sizes = [16, 8], strides = [1, 1]} : vector<16x128xf32> to vector<16x8xf32>
    %351 = arith.truncf %347 : vector<16x16xf32> to vector<16x16xbf16>
    %352 = arith.truncf %350 : vector<16x8xf32> to vector<16x8xbf16>
    %cst_119 = arith.constant dense<0.000000e+00> : vector<16x8xf32>
    %353 = tpu.matmul %351, %352, %cst_119 {dimension_numbers = #tpu.dot_dimension_numbers<[1], [0], [0], [1], [0, 0, 1, 1], [], []>} : vector<16x16xbf16>, vector<16x8xbf16>, vector<16x8xf32> -> vector<16x8xf32>
    %354 = tpu.reciprocal %349 {approx = true} : vector<16x1xf32> -> vector<16x1xf32>
    %355 = vector.broadcast %354 : vector<16x1xf32> to vector<16x8xf32>
    %356 = arith.mulf %353, %355 : vector<16x8xf32>
    %357 = vector.extract_strided_slice %303 {offsets = [0, 2], sizes = [16, 1], strides = [1, 1]} : vector<16x4xf32> to vector<16x1xf32>
    %358 = vector.extract_strided_slice %306 {offsets = [2, 0], sizes = [1, 16], strides = [1, 1]} : vector<4x16xf32> to vector<1x16xf32>
    %359 = vector.broadcast %357 : vector<16x1xf32> to vector<16x16xf32>
    %360 = vector.broadcast %358 : vector<1x16xf32> to vector<16x16xf32>
    %361 = arith.addf %359, %360 : vector<16x16xf32>
    %cst_120 = arith.constant 0.000000e+00 : f32
    %362 = vector.broadcast %cst_120 : f32 to vector<16x16xf32>
    %363 = arith.cmpf ogt, %361, %362 : vector<16x16xf32>
    %cst_121 = arith.constant 2.000000e-01 : f32
    %364 = vector.broadcast %cst_121 : f32 to vector<16x16xf32>
    %365 = arith.mulf %364, %361 : vector<16x16xf32>
    %366 = arith.select %363, %361, %365 : vector<16x16xi1>, vector<16x16xf32>
    %367 = arith.addf %366, %2 : vector<16x16xf32>
    %cst_122 = arith.constant dense<0xFF800000> : vector<16xf32>
    %368 = vector.multi_reduction <maximumf>, %367, %cst_122 [1] : vector<16x16xf32> to vector<16xf32>
    %369 = vector.shape_cast %368 : vector<16xf32> to vector<16x1xf32>
    %370 = vector.broadcast %369 : vector<16x1xf32> to vector<16x16xf32>
    %371 = arith.subf %367, %370 : vector<16x16xf32>
    %372 = math.exp %371 : vector<16x16xf32>
    %cst_123 = arith.constant dense<0.000000e+00> : vector<16xf32>
    %373 = vector.multi_reduction <add>, %372, %cst_123 [1] : vector<16x16xf32> to vector<16xf32>
    %374 = vector.shape_cast %373 : vector<16xf32> to vector<16x1xf32>
    %375 = vector.extract_strided_slice %300 {offsets = [0, 16], sizes = [16, 8], strides = [1, 1]} : vector<16x128xf32> to vector<16x8xf32>
    %376 = arith.truncf %372 : vector<16x16xf32> to vector<16x16xbf16>
    %377 = arith.truncf %375 : vector<16x8xf32> to vector<16x8xbf16>
    %cst_124 = arith.constant dense<0.000000e+00> : vector<16x8xf32>
    %378 = tpu.matmul %376, %377, %cst_124 {dimension_numbers = #tpu.dot_dimension_numbers<[1], [0], [0], [1], [0, 0, 1, 1], [], []>} : vector<16x16xbf16>, vector<16x8xbf16>, vector<16x8xf32> -> vector<16x8xf32>
    %379 = tpu.reciprocal %374 {approx = true} : vector<16x1xf32> -> vector<16x1xf32>
    %380 = vector.broadcast %379 : vector<16x1xf32> to vector<16x8xf32>
    %381 = arith.mulf %378, %380 : vector<16x8xf32>
    %382 = vector.extract_strided_slice %303 {offsets = [0, 3], sizes = [16, 1], strides = [1, 1]} : vector<16x4xf32> to vector<16x1xf32>
    %383 = vector.extract_strided_slice %306 {offsets = [3, 0], sizes = [1, 16], strides = [1, 1]} : vector<4x16xf32> to vector<1x16xf32>
    %384 = vector.broadcast %382 : vector<16x1xf32> to vector<16x16xf32>
    %385 = vector.broadcast %383 : vector<1x16xf32> to vector<16x16xf32>
    %386 = arith.addf %384, %385 : vector<16x16xf32>
    %cst_125 = arith.constant 0.000000e+00 : f32
    %387 = vector.broadcast %cst_125 : f32 to vector<16x16xf32>
    %388 = arith.cmpf ogt, %386, %387 : vector<16x16xf32>
    %cst_126 = arith.constant 2.000000e-01 : f32
    %389 = vector.broadcast %cst_126 : f32 to vector<16x16xf32>
    %390 = arith.mulf %389, %386 : vector<16x16xf32>
    %391 = arith.select %388, %386, %390 : vector<16x16xi1>, vector<16x16xf32>
    %392 = arith.addf %391, %2 : vector<16x16xf32>
    %cst_127 = arith.constant dense<0xFF800000> : vector<16xf32>
    %393 = vector.multi_reduction <maximumf>, %392, %cst_127 [1] : vector<16x16xf32> to vector<16xf32>
    %394 = vector.shape_cast %393 : vector<16xf32> to vector<16x1xf32>
    %395 = vector.broadcast %394 : vector<16x1xf32> to vector<16x16xf32>
    %396 = arith.subf %392, %395 : vector<16x16xf32>
    %397 = math.exp %396 : vector<16x16xf32>
    %cst_128 = arith.constant dense<0.000000e+00> : vector<16xf32>
    %398 = vector.multi_reduction <add>, %397, %cst_128 [1] : vector<16x16xf32> to vector<16xf32>
    %399 = vector.shape_cast %398 : vector<16xf32> to vector<16x1xf32>
    %400 = vector.extract_strided_slice %300 {offsets = [0, 24], sizes = [16, 8], strides = [1, 1]} : vector<16x128xf32> to vector<16x8xf32>
    %401 = arith.truncf %397 : vector<16x16xf32> to vector<16x16xbf16>
    %402 = arith.truncf %400 : vector<16x8xf32> to vector<16x8xbf16>
    %cst_129 = arith.constant dense<0.000000e+00> : vector<16x8xf32>
    %403 = tpu.matmul %401, %402, %cst_129 {dimension_numbers = #tpu.dot_dimension_numbers<[1], [0], [0], [1], [0, 0, 1, 1], [], []>} : vector<16x16xbf16>, vector<16x8xbf16>, vector<16x8xf32> -> vector<16x8xf32>
    %404 = tpu.reciprocal %399 {approx = true} : vector<16x1xf32> -> vector<16x1xf32>
    %405 = vector.broadcast %404 : vector<16x1xf32> to vector<16x8xf32>
    %406 = arith.mulf %403, %405 : vector<16x8xf32>
    %cst_130 = arith.constant 0.000000e+00 : f32
    %407 = vector.broadcast %cst_130 : f32 to vector<16x96xf32>
    %408 = tpu.concatenate %331, %356, %381, %406, %407 in 1 : vector<16x8xf32>, vector<16x8xf32>, vector<16x8xf32>, vector<16x8xf32>, vector<16x96xf32> -> vector<16x128xf32>
    %c2_131 = arith.constant 2 : index
    %c0_132 = arith.constant 0 : index
    %c0_133 = arith.constant 0 : index
    %409 = vector.load %arg5[%c2_131, %c0_132, %c0_133] : memref<3x1x128xf32, #tpu.memory_space<vmem>>, vector<1x1x128xf32>
    %410 = vector.shape_cast %409 : vector<1x1x128xf32> to vector<1x128xf32>
    %411 = vector.broadcast %410 : vector<1x128xf32> to vector<16x128xf32>
    %412 = arith.addf %408, %411 : vector<16x128xf32>
    %cst_134 = arith.constant dense<0.000000e+00> : vector<16xf32>
    %413 = vector.multi_reduction <add>, %412, %cst_134 [1] : vector<16x128xf32> to vector<16xf32>
    %414 = vector.shape_cast %413 : vector<16xf32> to vector<16x1xf32>
    %cst_135 = arith.constant 3.125000e-02 : f32
    %415 = vector.broadcast %cst_135 : f32 to vector<16x1xf32>
    %416 = arith.mulf %414, %415 : vector<16x1xf32>
    %417 = arith.mulf %412, %412 : vector<16x128xf32>
    %cst_136 = arith.constant dense<0.000000e+00> : vector<16xf32>
    %418 = vector.multi_reduction <add>, %417, %cst_136 [1] : vector<16x128xf32> to vector<16xf32>
    %419 = vector.shape_cast %418 : vector<16xf32> to vector<16x1xf32>
    %cst_137 = arith.constant 3.125000e-02 : f32
    %420 = vector.broadcast %cst_137 : f32 to vector<16x1xf32>
    %421 = arith.mulf %419, %420 : vector<16x1xf32>
    %422 = arith.mulf %416, %416 : vector<16x1xf32>
    %423 = arith.subf %421, %422 : vector<16x1xf32>
    %424 = vector.broadcast %416 : vector<16x1xf32> to vector<16x128xf32>
    %425 = arith.subf %412, %424 : vector<16x128xf32>
    %cst_138 = arith.constant 9.99999974E-6 : f32
    %426 = vector.broadcast %cst_138 : f32 to vector<16x1xf32>
    %427 = arith.addf %423, %426 : vector<16x1xf32>
    %428 = math.rsqrt %427 : vector<16x1xf32>
    %429 = vector.broadcast %428 : vector<16x1xf32> to vector<16x128xf32>
    %430 = arith.mulf %425, %429 : vector<16x128xf32>
    %c2_139 = arith.constant 2 : index
    %c0_140 = arith.constant 0 : index
    %c0_141 = arith.constant 0 : index
    %431 = vector.load %arg6[%c2_139, %c0_140, %c0_141] : memref<3x1x128xf32, #tpu.memory_space<vmem>>, vector<1x1x128xf32>
    %432 = vector.shape_cast %431 : vector<1x1x128xf32> to vector<1x128xf32>
    %433 = vector.broadcast %432 : vector<1x128xf32> to vector<16x128xf32>
    %434 = arith.mulf %430, %433 : vector<16x128xf32>
    %c2_142 = arith.constant 2 : index
    %c0_143 = arith.constant 0 : index
    %c0_144 = arith.constant 0 : index
    %435 = vector.load %arg7[%c2_142, %c0_143, %c0_144] : memref<3x1x128xf32, #tpu.memory_space<vmem>>, vector<1x1x128xf32>
    %436 = vector.shape_cast %435 : vector<1x1x128xf32> to vector<1x128xf32>
    %437 = vector.broadcast %436 : vector<1x128xf32> to vector<16x128xf32>
    %438 = arith.addf %434, %437 : vector<16x128xf32>
    %cst_145 = arith.constant 0.000000e+00 : f32
    %439 = vector.broadcast %cst_145 : f32 to vector<16x128xf32>
    %440 = arith.cmpf ogt, %438, %439 : vector<16x128xf32>
    %cst_146 = arith.constant 1.000000e-01 : f32
    %441 = vector.broadcast %cst_146 : f32 to vector<16x128xf32>
    %442 = arith.mulf %441, %438 : vector<16x128xf32>
    %443 = arith.select %440, %438, %442 : vector<16x128xi1>, vector<16x128xf32>
    %c0_147 = arith.constant 0 : index
    %c0_148 = arith.constant 0 : index
    %444 = vector.load %arg8[%c0_147, %c0_148] : memref<2x16xf32, #tpu.memory_space<vmem>>, vector<2x16xf32>
    %cst_149 = arith.constant dense<0.000000e+00> : vector<2x128xf32>
    %445 = tpu.matmul %444, %443, %cst_149 {dimension_numbers = #tpu.dot_dimension_numbers<[1], [0], [0], [1], [0, 0, 1, 1], [], []>} : vector<2x16xf32>, vector<16x128xf32>, vector<2x128xf32> -> vector<2x128xf32>
    %c0_150 = arith.constant 0 : index
    %c0_151 = arith.constant 0 : index
    %446 = vector.load %arg9[%c0_150, %c0_151] : memref<16x2xf32, #tpu.memory_space<vmem>>, vector<16x2xf32>
    %447 = vector.extract_strided_slice %446 {offsets = [0, 0], sizes = [16, 1], strides = [1, 1]} : vector<16x2xf32> to vector<16x1xf32>
    %cst_152 = arith.constant 0.000000e+00 : f32
    %448 = vector.broadcast %cst_152 : f32 to vector<16x1xf32>
    %449 = arith.cmpf ogt, %447, %448 : vector<16x1xf32>
    %cst_153 = arith.constant -1.000000e+09 : f32
    %450 = vector.shape_cast %449 : vector<16x1xi1> to vector<16x1xi1>
    %451 = vector.broadcast %450 : vector<16x1xi1> to vector<16x128xi1>
    %452 = vector.broadcast %cst_153 : f32 to vector<16x128xf32>
    %453 = arith.select %451, %443, %452 : vector<16x128xi1>, vector<16x128xf32>
    %cst_154 = arith.constant dense<0xFF800000> : vector<128xf32>
    %454 = vector.multi_reduction <maximumf>, %453, %cst_154 [0] : vector<16x128xf32> to vector<128xf32>
    %455 = vector.shape_cast %454 : vector<128xf32> to vector<1x128xf32>
    %456 = vector.extract_strided_slice %446 {offsets = [0, 1], sizes = [16, 1], strides = [1, 1]} : vector<16x2xf32> to vector<16x1xf32>
    %cst_155 = arith.constant 0.000000e+00 : f32
    %457 = vector.broadcast %cst_155 : f32 to vector<16x1xf32>
    %458 = arith.cmpf ogt, %456, %457 : vector<16x1xf32>
    %cst_156 = arith.constant -1.000000e+09 : f32
    %459 = vector.shape_cast %458 : vector<16x1xi1> to vector<16x1xi1>
    %460 = vector.broadcast %459 : vector<16x1xi1> to vector<16x128xi1>
    %461 = vector.broadcast %cst_156 : f32 to vector<16x128xf32>
    %462 = arith.select %460, %443, %461 : vector<16x128xi1>, vector<16x128xf32>
    %cst_157 = arith.constant dense<0xFF800000> : vector<128xf32>
    %463 = vector.multi_reduction <maximumf>, %462, %cst_157 [0] : vector<16x128xf32> to vector<128xf32>
    %464 = vector.shape_cast %463 : vector<128xf32> to vector<1x128xf32>
    %465 = tpu.concatenate %455, %464 in 0 : vector<1x128xf32>, vector<1x128xf32> -> vector<2x128xf32>
    %466 = tpu.concatenate %465, %445 in 1 : vector<2x128xf32>, vector<2x128xf32> -> vector<2x256xf32>
    %c0_158 = arith.constant 0 : index
    %c0_159 = arith.constant 0 : index
    %467 = vector.load %arg10[%c0_158, %c0_159] : memref<256x128xf32, #tpu.memory_space<vmem>>, vector<256x128xf32>
    %cst_160 = arith.constant dense<0.000000e+00> : vector<2x128xf32>
    %468 = tpu.matmul %466, %467, %cst_160 {dimension_numbers = #tpu.dot_dimension_numbers<[1], [0], [0], [1], [0, 0, 1, 1], [], []>} : vector<2x256xf32>, vector<256x128xf32>, vector<2x128xf32> -> vector<2x128xf32>
    %c0_161 = arith.constant 0 : index
    %c0_162 = arith.constant 0 : index
    %469 = vector.load %arg11[%c0_161, %c0_162] : memref<1x128xf32, #tpu.memory_space<vmem>>, vector<1x128xf32>
    %470 = vector.broadcast %469 : vector<1x128xf32> to vector<2x128xf32>
    %471 = arith.addf %468, %470 : vector<2x128xf32>
    %c0_163 = arith.constant 0 : index
    %c0_164 = arith.constant 0 : index
    %472 = vector.load %arg12[%c0_163, %c0_164] : memref<2x128xf32, #tpu.memory_space<vmem>>, vector<2x128xf32>
    tpu.vector_store %arg12[%c0_163, %c0_164], %471 {strides = array<i32>} : memref<2x128xf32, #tpu.memory_space<vmem>>, vector<2x128xf32>,
    return
  }
}

</mosaic_0001>

<bundles_post_ra>
// kernel: tpu_custom_call.1
= control target key start
LH: loop header
LB: loop body
LE: loop exit
PB: predicated region body
PF: predicated region fallthrough
CT: control target
= control target key end

     0   :  { %17 = vsyncpa [#allocation3], 0  ;;  %s2733_s0 = inlined_call_operand.vmem [shape: f32[16,128], index: 0, kind: input, shape index: {}]   ;;  %s2734_s1 = inlined_call_operand.vmem [shape: bf16[16,16], index: 1, kind: input, shape index: {}]   ;;  %s2735_s2 = inlined_call_operand.hbm [shape: bf16[3,128,128], index: 2, kind: input, shape index: {}]   ;;  %s2736_s3 = inlined_call_operand.vmem [shape: f32[3,4,128], index: 3, kind: input, shape index: {}]   ;;  %s2737_s4 = inlined_call_operand.vmem [shape: f32[3,128,4], index: 4, kind: input, shape index: {}]   ;;  %s2738_s5 = inlined_call_operand.vmem [shape: f32[3,1,128], index: 5, kind: input, shape index: {}]   ;;  %s2739_s6 = inlined_call_operand.vmem [shape: f32[3,1,128], index: 6, kind: input, shape index: {}]   ;;  %s2740_s7 = inlined_call_operand.vmem [shape: f32[3,1,128], index: 7, kind: input, shape index: {}]   ;;  %s2741_s8 = inlined_call_operand.vmem [shape: f32[2,16], index: 8, kind: input, shape index: {}]   ;;  %s2742_s9 = inlined_call_operand.vmem [shape: f32[16,2], index: 9, kind: input, shape index: {}]   ;;  %s2743_s10 = inlined_call_operand.vmem [shape: f32[256,128], index: 10, kind: input, shape index: {}]   ;;  %s2744_s11 = inlined_call_operand.vmem [shape: f32[1,128], index: 11, kind: input, shape index: {}]   ;;  %s2745_s12 = inlined_call_operand.hbm [shape: f32[2,128], index: 12, kind: output, shape index: {}]  }
   0x1   :  { %18 = vsyncpa [#allocation4], 0  ;;  %s27_s23 = sshll.u32 %s2735_s2, 4  ;;  %s2091_s24 = smov [#allocation2]   ;;  %s28_s23 = int_to_ptr.hbm [resolvable:$true] %s27_s23 }
   0x2   :  { %s29_s25 = sshll.u32 %s2091_s24, 4  ;;  %s2092_s26 = smov 64   ;;  %s30_s25 = int_to_ptr.vmem [resolvable:$true] %s29_s25 }
   0x3   :  { %s2093_s27 = smov 4  }
   0x4   :  { %35 = dma.hbm_to_vmem [thread:$0]  %s28_s23, 3072, %s30_s25, [#allocation3], %s2092_s26, %s2092_s26, %s2093_s27  }
   0x5   :  { %2087 = dma.done.wait [#allocation3], 3072  }
   0x6   :  { %2088 = vsyncadd [#allocation3], 4294964224  ;;  %v1861_v0 = vld [vmem:[#allocation2 + $0x38] sm:$0xff]  ;;  %v1860_v1 = vld [vmem:[#allocation2 + $0x30] sm:$0xff]  ;;  %v2094_v27 = vmov 2   ;;  %v2095_v28 = vmov 1  }
   0x7   :  { %130 = vmatpush.bf16.msra.mxu0 %v1861_v0  ;;  %v159_v2 = vld [vmem:[%s2737_s4 + $0x78] sm:$0xff]  ;;  %v158_v3 = vld [vmem:[%s2737_s4 + $0x70] sm:$0xff]  ;;  %v157_v4 = vld [vmem:[%s2737_s4 + $0x68] sm:$0xff]  ;;  %1898 = vset.pattern.permute.xlu2 %v2094_v27  ;;  %v2096_v29 = vmov 0   ;;  %s2097_s27 = smov 120   ;;  %v2098_v36 = vmov 3  }
   0x8   :  { %160 = vmatpush.msra.mxu1 %v159_v2  ;;  %v1859_v5 = vld [vmem:[#allocation2 + $0x28] sm:$0xff]  ;;  %v156_v6 = vld [vmem:[%s2737_s4 + $0x60] sm:$0xff]  ;;  %v155_v8 = vld [vmem:[%s2737_s4 + $0x58] sm:$0xff]  ;;  %1897 = vset.pattern.permute.xlu1 %v2095_v28  ;;  %vm225_vm1 = vcmask 130048   ;;  %s2100_s30 = smov 112   ;;  %s2101_s13 = smov 16  }
   0x9   :  { %v1858_v7 = vld [vmem:[#allocation2 + $0x20] sm:$0xff]  ;;  %v154_v9 = vld [vmem:[%s2737_s4 + $0x50] sm:$0xff]  ;;  %v153_v10 = vld [vmem:[%s2737_s4 + $0x48] sm:$0xff]  ;;  %1896 = vset.pattern.permute.xlu0 %v2096_v29  ;;  %s2102_s2 = smov 8   ;;  %s2103_s14 = smov 24   ;;  %vm478_vm9 = vcmask 64512  }
   0xa   :  { %161 = vmatpush.msra.mxu1 %v158_v3  ;;  %v1857_v11 = vld [vmem:[#allocation2 + $0x18] sm:$0xff]  ;;  %v152_v12 = vld [vmem:[%s2737_s4 + $0x40] sm:$0xff]  ;;  %v1856_v14 = vld [vmem:[#allocation2 + $0x10] sm:$0xff]  ;;  %vm483_vm10 = vcmask 195584   ;;  %vm486_vm11 = vcmask 261120   ;;  %s2104_s18 = smov [#allocation5]  }
   0xb   :  { %131 = vmatpush.bf16.msra.mxu0 %v1860_v1  ;;  %v151_v13 = vld [vmem:[%s2737_s4 + $0x38] sm:$0xff]  ;;  %v150_v15 = vld [vmem:[%s2737_s4 + $0x30] sm:$0xff]  ;;  %v149_v16 = vld [vmem:[%s2737_s4 + $0x28] sm:$0xff]  ;;  %s1693_s19 = sshll.u32 %s2104_s18, 4  ;;  %s1694_s19 = int_to_ptr.vmem [resolvable:$true] %s1693_s19 }
   0xc   :  { %162 = vmatpush.msra.mxu1 %v157_v4  ;;  %v1855_v17 = vld [vmem:[#allocation2 + $0x8] sm:$0xff]  ;;  %v148_v18 = vld [vmem:[%s2737_s4 + $0x20] sm:$0xff]  ;;  %v147_v19 = vld [vmem:[%s2737_s4 + $0x18] sm:$0xff] }
   0xd   :  { %v1854_v20 = vld [vmem:[#allocation2] sm:$0xff]  ;;  %v60_v22 = vld [vmem:[%s2733_s0 + $0x8] sm:$0xff]  ;;  %v146_v23 = vld [vmem:[%s2737_s4 + $0x10] sm:$0xff] }
   0xe   :  { %163 = vmatpush.msra.mxu1 %v156_v6  ;;  %v59_v21 = vld [vmem:[%s2733_s0] sm:$0xff]  ;;  %v145_v25 = vld [vmem:[%s2737_s4 + $0x8] sm:$0xff] }
   0xf   :  { %132 = vmatpush.bf16.msra.mxu0 %v1859_v5  ;;  %v65_v24 = vpack.c.bf16 %v60_v22, %v59_v21  ;;  %v144_v26 = vld [vmem:[%s2737_s4] sm:$0xff] }
  0x10   :  { %164 = vmatpush.msra.mxu1 %v155_v8  ;;  %v183_v33 = vld [vmem:[%s2736_s3] sm:$0xf] }
  0x11   :  { %v1879_v39 = vld [vmem:[%s2734_s1] sm:$0xff]   ;;  %s2099_s1 = smov 104  }
  0x12   :  { %165 = vmatpush.msra.mxu1 %v154_v9  ;;  %v2245_v42 = vunpack.c.l.bf16 %v1879_v39  ;;  %v2257_v1 = vunpack.c.h.bf16 %v1879_v39 }
  0x13   :  { %133 = vmatpush.bf16.msra.mxu0 %v1858_v7 }
  0x14   :  { %166 = vmatpush.msra.mxu1 %v153_v10 }
  0x16   :  { %167 = vmatpush.msra.mxu1 %v152_v12 }
  0x17   :  { %134 = vmatpush.bf16.msra.mxu0 %v1857_v11 }
  0x18   :  { %168 = vmatpush.msra.mxu1 %v151_v13 }
  0x1a   :  { %169 = vmatpush.msra.mxu1 %v150_v15 }
  0x1b   :  { %135 = vmatpush.bf16.msra.mxu0 %v1856_v14 }
  0x1c   :  { %170 = vmatpush.msra.mxu1 %v149_v16 }
  0x1e   :  { %171 = vmatpush.msra.mxu1 %v148_v18 }
  0x1f   :  { %136 = vmatpush.bf16.msra.mxu0 %v1855_v17 }
  0x20   :  { %172 = vmatpush.msra.mxu1 %v147_v19 }
  0x22   :  { %173 = vmatpush.msra.mxu1 %v146_v23 }
  0x23   :  { %137 = vmatpush.bf16.msra.mxu0 %v1854_v20 }
  0x24   :  { %174 = vmatpush.msra.mxu1 %v145_v25 }
  0x26   :  { %138 = vmatmul.bf16.vlgmr.msra.gmra.mxu0 %v65_v24  ;;  %175 = vmatpush.msra.mxu1 %v144_v26 }
  0xa3   :  { %v139_v30 = vpop.f32.mrf.mxu0 }
  0xa4   :  { %176 = vmatmul.f32.vlgmr.msra.gmra.mxu1 %v139_v30 }
  0xab   :  { %v141_v31 = vpop.f32.mrf.mxu0 }
  0xac   :  { %179 = vmatmul.f32.gmra.mxu1 %v141_v31  ;;  %198 = vmatpush.xpose.msra.mxu2 %v141_v31  ;;  %v2230_v32 = vpack.c.bf16 %v141_v31, %v139_v30 }
  0xb0   :  { %199 = vmatpush.xpose.msra.mxu2 %v139_v30 }
  0xb3   :  { %200 = vmatmul.f32.vlgmr.msra.gmra.mxu2 %v183_v33 }
  0xb4   :  { %256 = vmatpush.bf16.msrb.mxu2 %v2230_v32 }
 0x121   :  { %v177_v34 = vpop.f32.mrf.mxu1 }
 0x122   :  { %331 = vperm.xlu2 %1898, %v177_v34   ;;  %268 = vperm.xlu1 %1897, %v177_v34  }
 0x123   :  { %206 = vperm.xlu0 %1896, %v177_v34  }
 0x129   :  { %v180_v35 = vpop.f32.mrf.mxu1 }
 0x12a   :  { %306 = vrot.lane.b32.xlu2 %v2230_v32, %s2097_s27  ;;  %272 = vperm.xlu1 %1897, %v180_v35  }
 0x12b   :  { %211 = vperm.xlu0 %1896, %v180_v35  }
 0x132   :  { %335 = vperm.xlu2 %1898, %v180_v35   ;;  %1900 = vset.pattern.permute.xlu1 %v2098_v36 }
 0x133   :  { %1899 = vset.pattern.permute.xlu0 %v2098_v36  ;;  %397 = vperm.xlu1 %1900, %v180_v35  }
 0x134   :  { %393 = vperm.xlu0 %1899, %v177_v34  }
 0x136   :  { %v201_v37 = vpop.f32.mrf.mxu2 }
 0x137   :  { %v338_v38 = vperm.slane %v201_v37, 2  ;;  %v275_v48 = vperm.slane %v201_v37, 1  ;;  %v214_v50 = vperm.slane %v201_v37, 0  ;;  %v400_v11 = vperm.slane %v201_v37, 3 }
 0x13b   :  { %1904 = vset.pattern.permute.xlu1 %v2096_v29 }
 0x13c   :  { %1901 = vset.pattern.permute.xlu0 %v2096_v29 }
 0x17c   :  { %v332_v40 = vpop.permute.xlu2 %331 }
 0x17d   :  { %v339_v41 = vadd.f32 %v338_v38, %v332_v40 }
 0x17f   :  { %vm341_vm0 = vcmp.gt.f32.partialorder %v339_v41, 0.0  ;;  %v343_v43 = vmul.f32 0.2, %v339_v41 }
 0x181   :  { %v345_v44 = vsel %vm341_vm0, %v339_v41, %v343_v43 }
 0x182   :  { %v2248_v45 = vadd.f32 %v2245_v42, %v345_v44 }
 0x184   :  { %v307_v46 = vpop.permute.xlu2 %306  ;;  %v349_v47 = vsel %vm225_vm1, %v2248_v45, -inf }
 0x185   :  { %319 = vmatpush.bf16.msra.mxu2 %v307_v46  ;;  %350 = vmax.xlane.f32.xlu1 %v349_v47 }
 0x18c   :  { %v336_v49 = vpop.permute.xlu2 %335 }
 0x18d   :  { %v340_v52 = vadd.f32 %v338_v38, %v336_v49 }
 0x18f   :  { %v344_v58 = vmul.f32 0.2, %v340_v52  ;;  %vm342_vm4 = vcmp.gt.f32.partialorder %v340_v52, 0.0 }
 0x191   :  { %v346_v5 = vsel %vm342_vm4, %v340_v52, %v344_v58 }
 0x192   :  { %v2262_v7 = vadd.f32 %v2257_v1, %v346_v5 }
 0x194   :  { %v269_v51 = vpop.permute.xlu1 %268  ;;  %v352_v12 = vsel %vm225_vm1, %v2262_v7, -inf }
 0x195   :  { %v276_v53 = vadd.f32 %v275_v48, %v269_v51  ;;  %v207_v54 = vpop.permute.xlu0 %206 }
 0x196   :  { %v215_v55 = vadd.f32 %v214_v50, %v207_v54 }
 0x197   :  { %vm278_vm2 = vcmp.gt.f32.partialorder %v276_v53, 0.0  ;;  %v280_v56 = vmul.f32 0.2, %v276_v53 }
 0x198   :  { %vm217_vm3 = vcmp.gt.f32.partialorder %v215_v55, 0.0  ;;  %v219_v57 = vmul.f32 0.2, %v215_v55 }
 0x199   :  { %v282_v59 = vsel %vm278_vm2, %v276_v53, %v280_v56 }
 0x19a   :  { %v221_v60 = vsel %vm217_vm3, %v215_v55, %v219_v57  ;;  %v284_v61 = vadd.f32 %v2245_v42, %v282_v59 }
 0x19b   :  { %v2254_v62 = vadd.f32 %v2245_v42, %v221_v60 }
 0x19c   :  { %v273_v63 = vpop.permute.xlu1 %272  ;;  %v286_v0 = vsel %vm225_vm1, %v284_v61, -inf }
 0x19d   :  { %v277_v2 = vadd.f32 %v275_v48, %v273_v63  ;;  %v212_v3 = vpop.permute.xlu0 %211  ;;  %v226_v4 = vsel %vm225_vm1, %v2254_v62, -inf  ;;  %287 = vmax.xlane.f32.xlu0 %v286_v0 }
 0x19e   :  { %227 = vmax.xlane.f32.xlu2 %v226_v4  ;;  %v216_v16 = vadd.f32 %v214_v50, %v212_v3 }
 0x19f   :  { %vm279_vm5 = vcmp.gt.f32.partialorder %v277_v2, 0.0  ;;  %v281_v6 = vmul.f32 0.2, %v277_v2 }
 0x1a0   :  { %v220_v21 = vmul.f32 0.2, %v216_v16  ;;  %vm218_vm8 = vcmp.gt.f32.partialorder %v216_v16, 0.0 }
 0x1a1   :  { %v283_v8 = vsel %vm279_vm5, %v277_v2, %v281_v6 }
 0x1a2   :  { %v285_v9 = vadd.f32 %v2257_v1, %v283_v8  ;;  %v222_v30 = vsel %vm218_vm8, %v216_v16, %v220_v21 }
 0x1a3   :  { %v224_v31 = vadd.f32 %v2257_v1, %v222_v30 }
 0x1a4   :  { %v289_v10 = vsel %vm225_vm1, %v285_v9, -inf }
 0x1a5   :  { %v398_v13 = vpop.permute.xlu1 %397  ;;  %353 = vmax.xlane.f32.xlu0 %v352_v12  ;;  %v229_v33 = vsel %vm225_vm1, %v224_v31, -inf }
 0x1a6   :  { %290 = vmax.xlane.f32.xlu2 %v289_v10  ;;  %v402_v14 = vadd.f32 %v400_v11, %v398_v13  ;;  %v394_v15 = vpop.permute.xlu0 %393 }
 0x1a7   :  { %v401_v17 = vadd.f32 %v400_v11, %v394_v15 }
 0x1a8   :  { %vm404_vm6 = vcmp.gt.f32.partialorder %v402_v14, 0.0  ;;  %v406_v18 = vmul.f32 0.2, %v402_v14 }
 0x1a9   :  { %vm403_vm7 = vcmp.gt.f32.partialorder %v401_v17, 0.0  ;;  %v405_v19 = vmul.f32 0.2, %v401_v17 }
 0x1aa   :  { %v408_v20 = vsel %vm404_vm6, %v402_v14, %v406_v18 }
 0x1ab   :  { %v410_v22 = vadd.f32 %v2257_v1, %v408_v20  ;;  %v407_v23 = vsel %vm403_vm7, %v401_v17, %v405_v19 }
 0x1ac   :  { %v409_v24 = vadd.f32 %v2245_v42, %v407_v23 }
 0x1ad   :  { %v414_v25 = vsel %vm225_vm1, %v410_v22, -inf }
 0x1ae   :  { %415 = vmax.xlane.f32.xlu0 %v414_v25  ;;  %v411_v26 = vsel %vm225_vm1, %v409_v24, -inf }
 0x1af   :  { %412 = vmax.xlane.f32.xlu1 %v411_v26 }
 0x1b7   :  { %230 = vmax.xlane.f32.xlu1 %v229_v33 }
 0x1be   :  { %430 = vrot.lane.b32.xlu2 %v2230_v32, %s2099_s1 }
 0x1d0   :  { %368 = vrot.lane.b32.xlu1 %v2230_v32, %s2100_s30 }
 0x1f8   :  { %v351_v34 = vpop.xlane.xlu1 %350 }
 0x1f9   :  { %v355_v39 = vsub.f32 %v2248_v45, %v351_v34 }
 0x1fb   :  { %v357_v41 = vmul.f32 1.442695, %v355_v39 }
 0x210   :  { %v288_v35 = vpop.xlane.xlu0 %287 }
 0x211   :  { %v228_v37 = vpop.xlane.xlu2 %227  ;;  %v292_v38 = vsub.f32 %v284_v61, %v288_v35 }
 0x212   :  { %v232_v47 = vsub.f32 %v2254_v62, %v228_v37 }
 0x213   :  { %v294_v40 = vmul.f32 1.442695, %v292_v38 }
 0x214   :  { %v234_v50 = vmul.f32 1.442695, %v232_v47 }
 0x215   :  { %1931 = vpow2.f32 %v294_v40 }
 0x216   :  { %1933 = vpow2.f32 %v357_v41 }
 0x218   :  { %v354_v32 = vpop.xlane.xlu0 %353 }
 0x219   :  { %v291_v43 = vpop.xlane.xlu2 %290  ;;  %v356_v45 = vsub.f32 %v2262_v7, %v354_v32 }
 0x21a   :  { %v293_v44 = vsub.f32 %v285_v9, %v291_v43 }
 0x21b   :  { %v1932_v46 = vpop.eup %1931  ;;  %v359_v58 = vmul.f32 1.442695, %v356_v45 }
 0x21c   :  { %v296_v48 = vmul.f32 1.442695, %v293_v44  ;;  %v298_v49 = vsel %vm225_vm1, %v1932_v46, 0.0  ;;  %v1934_v51 = vpop.eup %1933 }
 0x21d   :  { %299 = vadd.xlane.f32.xlu0 %v298_v49  ;;  %v361_v55 = vsel %vm225_vm1, %v1934_v51, 0.0 }
 0x21e   :  { %1935 = vpow2.f32 %v296_v48 }
 0x21f   :  { %1937 = vpow2.f32 %v234_v50 }
 0x221   :  { %v416_v59 = vpop.xlane.xlu0 %415  ;;  %v431_v10 = vpop.permute.xlu2 %430 }
 0x222   :  { %v413_v52 = vpop.xlane.xlu1 %412  ;;  %v418_v62 = vsub.f32 %v410_v22, %v416_v59 }
 0x223   :  { %v417_v53 = vsub.f32 %v409_v24, %v413_v52 }
 0x224   :  { %v1936_v54 = vpop.eup %1935  ;;  %v421_v5 = vmul.f32 1.442695, %v418_v62 }
 0x225   :  { %v419_v56 = vmul.f32 1.442695, %v417_v53  ;;  %v301_v57 = vsel %vm225_vm1, %v1936_v54, 0.0  ;;  %362 = vadd.xlane.f32.xlu0 %v361_v55  ;;  %v1938_v60 = vpop.eup %1937  ;;  %v304_v16 = vpack.c.bf16 %v1936_v54, %v1932_v46 }
 0x226   :  { %302 = vadd.xlane.f32.xlu2 %v301_v57  ;;  %v238_v0 = vsel %vm225_vm1, %v1938_v60, 0.0 }
 0x227   :  { %1939 = vpow2.f32 %v419_v56 }
 0x228   :  { %1941 = vpow2.f32 %v359_v58  ;;  %v1921_v58 = vld [vmem:[%s2738_s5] ss:$0 sm:$0xff] }
 0x22a   :  { %v231_v61 = vpop.xlane.xlu1 %230 }
 0x22b   :  { %v233_v63 = vsub.f32 %v224_v31, %v231_v61 }
 0x22d   :  { %v1940_v2 = vpop.eup %1939  ;;  %v236_v3 = vmul.f32 1.442695, %v233_v63  ;;  %239 = vadd.xlane.f32.xlu0 %v238_v0 }
 0x22e   :  { %v423_v4 = vsel %vm225_vm1, %v1940_v2, 0.0  ;;  %v1942_v6 = vpop.eup %1941 }
 0x22f   :  { %1943 = vpow2.f32 %v236_v3  ;;  %424 = vadd.xlane.f32.xlu1 %v423_v4  ;;  %v364_v7 = vsel %vm225_vm1, %v1942_v6, 0.0  ;;  %v367_v14 = vpack.c.bf16 %v1942_v6, %v1934_v51 }
 0x230   :  { %1945 = vpow2.f32 %v421_v5 }
 0x235   :  { %v1944_v8 = vpop.eup %1943  ;;  %365 = vadd.xlane.f32.xlu0 %v364_v7 }
 0x236   :  { %v244_v9 = vpack.c.bf16 %v1944_v8, %v1938_v60  ;;  %v1946_v11 = vpop.eup %1945  ;;  %v241_v15 = vsel %vm225_vm1, %v1944_v8, 0.0 }
 0x237   :  { %v426_v12 = vsel %vm225_vm1, %v1946_v11, 0.0  ;;  %v429_v17 = vpack.c.bf16 %v1946_v11, %v1940_v2  ;;  %v1869_v11 = vld [vmem:[#allocation2 + $0x78] sm:$0xff] }
 0x238   :  { %1737 = vmatmul.msk.bf16.vlgmr.msrb.gmra.mxu2 %vm225_vm1, %v244_v9 }
 0x239   :  { %443 = vmatpush.bf16.msrb.mxu2 %v431_v10 }
 0x23d   :  { %427 = vadd.xlane.f32.xlu0 %v426_v12  ;;  %v1868_v12 = vld [vmem:[#allocation2 + $0x70] sm:$0xff] }
 0x242   :  { %v369_v13 = vpop.permute.xlu1 %368 }
 0x243   :  { %381 = vmatpush.bf16.msra.mxu3 %v369_v13  ;;  %v1867_v13 = vld [vmem:[#allocation2 + $0x68] sm:$0xff] }
 0x245   :  { %242 = vadd.xlane.f32.xlu0 %v241_v15  ;;  %v1865_v15 = vld [vmem:[#allocation2 + $0x58] sm:$0xff] }
 0x246   :  { %1739 = vmatmul.msk.bf16.vlgmr.msra.gmra.mxu3 %vm225_vm1, %v367_v14  ;;  %v1866_v14 = vld [vmem:[#allocation2 + $0x60] sm:$0xff] }
 0x247   :  { %623 = vmatpush.bf16.msrb.mxu3 %v1869_v11 }
 0x248   :  { %1738 = vmatmul.msk.bf16.vlgmr.msra.gmra.mxu2 %vm225_vm1, %v304_v16 }
 0x24b   :  { %624 = vmatpush.bf16.msrb.mxu3 %v1868_v12 }
 0x24f   :  { %625 = vmatpush.bf16.msrb.mxu3 %v1867_v13 }
 0x253   :  { %626 = vmatpush.bf16.msrb.mxu3 %v1866_v14  ;;  %v1774_v14 = vld [vmem:[%s2737_s4 + $0x88] sm:$0xff] }
 0x257   :  { %627 = vmatpush.bf16.msrb.mxu3 %v1865_v15 }
 0x258   :  { %1740 = vmatmul.msk.bf16.vlgmr.msrb.gmra.mxu2 %vm225_vm1, %v429_v17 }
 0x290   :  { %v300_v18 = vpop.xlane.xlu0 %299 }
 0x298   :  { %v363_v19 = vpop.xlane.xlu0 %362 }
 0x299   :  { %v303_v31 = vpop.xlane.xlu2 %302 }
 0x2a0   :  { %v240_v20 = vpop.xlane.xlu0 %239 }
 0x2a1   :  { %1947 = vrcp.f32 %v240_v20 }
 0x2a2   :  { %1949 = vrcp.f32 %v363_v19  ;;  %v425_v38 = vpop.xlane.xlu1 %424  ;;  %v1864_v19 = vld [vmem:[#allocation2 + $0x50] sm:$0xff] }
 0x2a3   :  { %628 = vmatpush.bf16.msrb.mxu3 %v1864_v19  ;;  %v1773_v19 = vld [vmem:[%s2737_s4 + $0x80] sm:$0xff] }
 0x2a7   :  { %v1948_v21 = vpop.eup %1947 }
 0x2a8   :  { %v366_v25 = vpop.xlane.xlu0 %365  ;;  %v1950_v26 = vpop.eup %1949 }
 0x2a9   :  { %1951 = vrcp.f32 %v366_v25 }
 0x2aa   :  { %1953 = vrcp.f32 %v303_v31 }
 0x2ab   :  { %1955 = vrcp.f32 %v300_v18 }
 0x2ac   :  { %1957 = vrcp.f32 %v425_v38  ;;  %v1787_v38 = vld [vmem:[%s2737_s4 + $0xf0] sm:$0xff] }
 0x2af   :  { %v1952_v35 = vpop.eup %1951 }
 0x2b0   :  { %v1954_v40 = vpop.eup %1953  ;;  %v428_v46 = vpop.xlane.xlu0 %427 }
 0x2b1   :  { %v1956_v44 = vpop.eup %1955  ;;  %1959 = vrcp.f32 %v428_v46  ;;  %v1785_v46 = vld [vmem:[%s2737_s4 + $0xe0] sm:$0xff] }
 0x2b2   :  { %v1958_v48 = vpop.eup %1957 }
 0x2b7   :  { %v1960_v50 = vpop.eup %1959 }
 0x2b8   :  { %v243_v45 = vpop.xlane.xlu0 %242 }
 0x2b9   :  { %1961 = vrcp.f32 %v243_v45  ;;  %v1782_v45 = vld [vmem:[%s2737_s4 + $0xc8] sm:$0xff] }
 0x2bb   :  { %v258_v22 = vpop.f32.mrf.mxu2 }
 0x2bc   :  { %v265_v23 = vmul.f32 %v1948_v21, %v258_v22  ;;  %v1863_v22 = vld [vmem:[#allocation2 + $0x48] sm:$0xff] }
 0x2bd   :  { %629 = vmatpush.bf16.msrb.mxu3 %v1863_v22 }
 0x2bf   :  { %v1962_v0 = vpop.eup %1961 }
 0x2c3   :  { %v260_v24 = vpop.f32.mrf.mxu2 }
 0x2c4   :  { %v266_v2 = vmul.f32 %v1962_v0, %v260_v24  ;;  %v1923_v0 = vld [vmem:[%s2740_s7] ss:$0 sm:$0xff] }
 0x2c9   :  { %v383_v30 = vpop.f32.mrf.mxu3 }
 0x2ca   :  { %v390_v33 = vmul.f32 %v1950_v26, %v383_v30  ;;  %v1862_v26 = vld [vmem:[#allocation2 + $0x40] sm:$0xff] }
 0x2cb   :  { %v321_v34 = vpop.f32.mrf.mxu2  ;;  %630 = vmatpush.bf16.msrb.mxu3 %v1862_v26 }
 0x2cc   :  { %464 = vrot.lane.b32.xlu1 %v390_v33, %s2101_s13  ;;  %v328_v47 = vmul.f32 %v1956_v44, %v321_v34 }
 0x2d1   :  { %v385_v37 = vpop.f32.mrf.mxu3 }
 0x2d2   :  { %v391_v39 = vmul.f32 %v1952_v35, %v385_v37  ;;  %v1788_v37 = vld [vmem:[%s2737_s4 + $0xf8] sm:$0xff] }
 0x2d3   :  { %v323_v41 = vpop.f32.mrf.mxu2  ;;  %654 = vmatpush.msrb.mxu0 %v1788_v37 }
 0x2d4   :  { %v329_v43 = vmul.f32 %v1954_v40, %v323_v41  ;;  %466 = vrot.lane.b32.xlu0 %v391_v39, %s2101_s13 }
 0x2d5   :  { %655 = vmatpush.msrb.mxu0 %v1787_v38 }
 0x2d6   :  { %458 = vrot.lane.b32.xlu2 %v329_v43, %s2102_s2  ;;  %v1786_v43 = vld [vmem:[%s2737_s4 + $0xe8] sm:$0xff] }
 0x2d7   :  { %656 = vmatpush.msrb.mxu0 %v1786_v43 }
 0x2d9   :  { %657 = vmatpush.msrb.mxu0 %v1785_v46 }
 0x2db   :  { %v445_v49 = vpop.f32.mrf.mxu2 }
 0x2dc   :  { %v452_v32 = vmul.f32 %v1958_v48, %v445_v49  ;;  %456 = vrot.lane.b32.xlu0 %v328_v47, %s2102_s2  ;;  %v1784_v48 = vld [vmem:[%s2737_s4 + $0xd8] sm:$0xff] }
 0x2dd   :  { %658 = vmatpush.msrb.mxu0 %v1784_v48 }
 0x2de   :  { %472 = vrot.lane.b32.xlu2 %v452_v32, %s2103_s14  ;;  %v1783_v32 = vld [vmem:[%s2737_s4 + $0xd0] sm:$0xff] }
 0x2df   :  { %659 = vmatpush.msrb.mxu0 %v1783_v32 }
 0x2e1   :  { %660 = vmatpush.msrb.mxu0 %v1782_v45 }
 0x2e3   :  { %v447_v51 = vpop.f32.mrf.mxu2 }
 0x2e4   :  { %v453_v52 = vmul.f32 %v1960_v50, %v447_v51 }
 0x2e6   :  { %474 = vrot.lane.b32.xlu0 %v453_v52, %s2103_s14 }
 0x330   :  { %v459_v53 = vpop.permute.xlu2 %458 }
 0x331   :  { %v480_v4 = vsel %vm478_vm9, %v266_v2, %v459_v53 }
 0x338   :  { %v473_v59 = vpop.permute.xlu2 %472 }
 0x33e   :  { %v465_v56 = vpop.permute.xlu1 %464 }
 0x346   :  { %v467_v54 = vpop.permute.xlu0 %466 }
 0x347   :  { %v482_v5 = vsel %vm225_vm1, %v480_v4, %v467_v54 }
 0x34e   :  { %v457_v55 = vpop.permute.xlu0 %456 }
 0x34f   :  { %v479_v57 = vsel %vm478_vm9, %v265_v23, %v457_v55 }
 0x350   :  { %v481_v60 = vsel %vm225_vm1, %v479_v57, %v465_v56  ;;  %v1781_v56 = vld [vmem:[%s2737_s4 + $0xc0] sm:$0xff] }
 0x351   :  { %v484_v61 = vsel %vm483_vm10, %v481_v60, %v473_v59  ;;  %v1780_v60 = vld [vmem:[%s2737_s4 + $0xb8] sm:$0xff]  ;;  %661 = vmatpush.msrb.mxu0 %v1781_v56 }
 0x352   :  { %v487_v62 = vsel %vm486_vm11, %v484_v61, 0.0 }
 0x353   :  { %v2306_v63 = vadd.f32 %v1921_v58, %v487_v62  ;;  %v1779_v62 = vld [vmem:[%s2737_s4 + $0xb0] sm:$0xff]  ;;  %662 = vmatpush.msrb.mxu0 %v1780_v60 }
 0x355   :  { %495 = vadd.xlane.f32.xlu2 %v2306_v63  ;;  %v501_v3 = vmul.f32 %v2306_v63, %v2306_v63  ;;  %663 = vmatpush.msrb.mxu0 %v1779_v62 }
 0x357   :  { %503 = vadd.xlane.f32.xlu1 %v501_v3  ;;  %v1778_v3 = vld [vmem:[%s2737_s4 + $0xa8] sm:$0xff] }
 0x358   :  { %v475_v6 = vpop.permute.xlu0 %474  ;;  %664 = vmatpush.msrb.mxu0 %v1778_v3 }
 0x359   :  { %v485_v7 = vsel %vm483_vm10, %v482_v5, %v475_v6  ;;  %v1777_v6 = vld [vmem:[%s2737_s4 + $0xa0] sm:$0xff] }
 0x35a   :  { %v488_v8 = vsel %vm486_vm11, %v485_v7, 0.0  ;;  %665 = vmatpush.msrb.mxu0 %v1777_v6 }
 0x35b   :  { %v2315_v9 = vadd.f32 %v1921_v58, %v488_v8  ;;  %v1922_v58 = vld [vmem:[%s2739_s6] ss:$0 sm:$0xff] }
 0x35d   :  { %497 = vadd.xlane.f32.xlu0 %v2315_v9  ;;  %v502_v10 = vmul.f32 %v2315_v9, %v2315_v9 }
 0x35f   :  { %505 = vadd.xlane.f32.xlu2 %v502_v10  ;;  %v1776_v10 = vld [vmem:[%s2737_s4 + $0x98] sm:$0xff] }
 0x360   :  { %666 = vmatpush.msrb.mxu0 %v1776_v10 }
 0x3c8   :  { %v496_v16 = vpop.xlane.xlu2 %495 }
 0x3c9   :  { %v499_v17 = vmul.f32 0.03125, %v496_v16 }
 0x3ca   :  { %v504_v18 = vpop.xlane.xlu1 %503 }
 0x3cb   :  { %v509_v20 = vmul.f32 %v499_v17, %v499_v17  ;;  %v507_v21 = vmul.f32 0.03125, %v504_v18  ;;  %v513_v53 = vsub.f32 %v2306_v63, %v499_v17 }
 0x3cd   :  { %v511_v23 = vsub.f32 %v507_v21, %v509_v20 }
 0x3cf   :  { %v515_v24 = vadd.f32 1e-05, %v511_v23  ;;  %v1789_v23 = vld [vmem:[%s2736_s3 + $0x4] sm:$0xf] }
 0x3d0   :  { %v498_v25 = vpop.xlane.xlu0 %497 }
 0x3d1   :  { %1963 = vrsqrt.f32 %v515_v24  ;;  %v500_v30 = vmul.f32 0.03125, %v498_v25  ;;  %vm523_vm13 = vweird.f32 %v515_v24 }
 0x3d2   :  { %v506_v31 = vpop.xlane.xlu2 %505 }
 0x3d3   :  { %v510_v33 = vmul.f32 %v500_v30, %v500_v30  ;;  %v508_v34 = vmul.f32 0.03125, %v506_v31  ;;  %v514_v4 = vsub.f32 %v2315_v9, %v500_v30  ;;  %v1775_v9 = vld [vmem:[%s2737_s4 + $0x90] sm:$0xff] }
 0x3d4   :  { %667 = vmatpush.msrb.mxu0 %v1775_v9 }
 0x3d5   :  { %v512_v35 = vsub.f32 %v508_v34, %v510_v33 }
 0x3d6   :  { %668 = vmatpush.msrb.mxu0 %v1774_v14 }
 0x3d7   :  { %v1964_v39 = vpop.eup %1963  ;;  %v516_v40 = vadd.f32 1e-05, %v512_v35 }
 0x3d8   :  { %v518_v41 = vmul.f32 %v1964_v39, %v515_v24  ;;  %vm524_vm12 = vweird.f32 %v1964_v39  ;;  %669 = vmatpush.msrb.mxu0 %v1773_v19 }
 0x3d9   :  { %1965 = vrsqrt.f32 %v516_v40  ;;  %vm525_vm14 = vmor %vm523_vm13, %vm524_vm12  ;;  %vm533_vm0 = vweird.f32 %v516_v40 }
 0x3da   :  { %v519_v44 = vmul.f32 %v1964_v39, %v518_v41 }
 0x3dc   :  { %v520_v47 = vmul.f32 0.5, %v519_v44 }
 0x3de   :  { %v521_v49 = vsub.f32 1.5, %v520_v47 }
 0x3df   :  { %v1966_v50 = vpop.eup %1965 }
 0x3e0   :  { %v522_v51 = vmul.f32 %v1964_v39, %v521_v49  ;;  %v528_v52 = vmul.f32 %v1966_v50, %v516_v40  ;;  %vm534_vm15 = vweird.f32 %v1966_v50 }
 0x3e1   :  { %vm535_vm2 = vmor %vm533_vm0, %vm534_vm15 }
 0x3e2   :  { %v526_v54 = vsel %vm525_vm14, %v1964_v39, %v522_v51  ;;  %v529_v55 = vmul.f32 %v1966_v50, %v528_v52 }
 0x3e3   :  { %v537_v57 = vmul.f32 %v526_v54, %v513_v53 }
 0x3e4   :  { %v530_v59 = vmul.f32 0.5, %v529_v55 }
 0x3e5   :  { %v543_v63 = vmul.f32 %v1922_v58, %v537_v57 }
 0x3e6   :  { %v531_v61 = vsub.f32 1.5, %v530_v59 }
 0x3e7   :  { %v549_v8 = vadd.f32 %v1923_v0, %v543_v63 }
 0x3e8   :  { %v532_v2 = vmul.f32 %v1966_v50, %v531_v61 }
 0x3e9   :  { %v553_v13 = vmul.f32 0.1, %v549_v8  ;;  %vm551_vm3 = vcmp.gt.f32.partialorder %v549_v8, 0.0 }
 0x3ea   :  { %v536_v5 = vsel %vm535_vm2, %v1966_v50, %v532_v2 }
 0x3eb   :  { %v538_v7 = vmul.f32 %v536_v5, %v514_v4  ;;  %v555_v16 = vsel %vm551_vm3, %v549_v8, %v553_v13 }
 0x3ed   :  { %v544_v11 = vmul.f32 %v1922_v58, %v538_v7 }
 0x3ef   :  { %v550_v12 = vadd.f32 %v1923_v0, %v544_v11 }
 0x3f1   :  { %vm552_vm4 = vcmp.gt.f32.partialorder %v550_v12, 0.0  ;;  %v554_v15 = vmul.f32 0.1, %v550_v12 }
 0x3f3   :  { %v556_v17 = vsel %vm552_vm4, %v550_v12, %v554_v15 }
 0x3f4   :  { %v557_v18 = vpack.c.bf16 %v556_v17, %v555_v16 }
 0x3f6   :  { %631 = vmatmul.bf16.vlgmr.msrb.gmra.mxu3 %v557_v18 }
 0x479   :  { %v632_v20 = vpop.f32.mrf.mxu3 }
 0x47a   :  { %670 = vmatmul.f32.vlgmr.msrb.gmra.mxu0 %v632_v20 }
 0x481   :  { %v634_v21 = vpop.f32.mrf.mxu3 }
 0x482   :  { %v2376_v22 = vpack.c.bf16 %v634_v21, %v632_v20  ;;  %673 = vmatmul.f32.gmra.mxu0 %v634_v21  ;;  %693 = vmatpush.xpose.msrb.mxu1 %v634_v21 }
 0x484   :  { %750 = vmatpush.bf16.msra.mxu2 %v2376_v22 }
 0x486   :  { %694 = vmatpush.xpose.msrb.mxu1 %v632_v20 }
 0x489   :  { %695 = vmatmul.f32.vlgmr.msrb.gmra.mxu1 %v1789_v23 }
 0x4f7   :  { %v671_v24 = vpop.f32.mrf.mxu0 }
 0x4f8   :  { %825 = vperm.xlu2 %1898, %v671_v24   ;;  %701 = vperm.xlu0 %1901, %v671_v24  }
 0x4ff   :  { %v674_v25 = vpop.f32.mrf.mxu0 }
 0x500   :  { %1902 = vset.pattern.permute.xlu2 %v2098_v36  ;;  %1907 = vset.pattern.permute.xlu0 %v2095_v28 }
 0x501   :  { %706 = vperm.xlu1 %1904, %v674_v25   ;;  %887 = vperm.xlu2 %1902, %v671_v24  }
 0x502   :  { %766 = vperm.xlu0 %1907, %v674_v25  }
 0x506   :  { %v2390_v26 = vpop.f32.mrf.mxu1 }
 0x507   :  { %v832_v30 = vperm.slane %v2390_v26, 2  ;;  %v894_v37 = vperm.slane %v2390_v26, 3  ;;  %v769_v46 = vperm.slane %v2390_v26, 1  ;;  %v709_v51 = vperm.slane %v2390_v26, 0 }
 0x509   :  { %1905 = vset.pattern.permute.xlu1 %v2094_v27  ;;  %1903 = vset.pattern.permute.xlu2 %v2095_v28 }
 0x50a   :  { %829 = vperm.xlu1 %1905, %v674_v25   ;;  %762 = vperm.xlu2 %1903, %v671_v24  }
 0x50b   :  { %1908 = vset.pattern.permute.xlu0 %v2096_v29 }
 0x512   :  { %1906 = vset.pattern.permute.xlu1 %v2098_v36  ;;  %1912 = vset.pattern.permute.xlu2 %v2096_v29 }
 0x513   :  { %891 = vperm.xlu1 %1906, %v674_v25  }
 0x51b   :  { %1909 = vset.pattern.permute.xlu1 %v2095_v28 }
 0x552   :  { %v826_v31 = vpop.permute.xlu2 %825 }
 0x553   :  { %v833_v33 = vadd.f32 %v832_v30, %v826_v31 }
 0x555   :  { %vm835_vm5 = vcmp.gt.f32.partialorder %v833_v33, 0.0  ;;  %v837_v34 = vmul.f32 0.2, %v833_v33 }
 0x557   :  { %v839_v35 = vsel %vm835_vm5, %v833_v33, %v837_v34 }
 0x558   :  { %v2395_v38 = vadd.f32 %v2245_v42, %v839_v35 }
 0x55a   :  { %v843_v39 = vsel %vm225_vm1, %v2395_v38, -inf }
 0x55b   :  { %v888_v40 = vpop.permute.xlu2 %887  ;;  %844 = vmax.xlane.f32.xlu0 %v843_v39 }
 0x55c   :  { %v895_v41 = vadd.f32 %v894_v37, %v888_v40 }
 0x55e   :  { %vm897_vm6 = vcmp.gt.f32.partialorder %v895_v41, 0.0  ;;  %v899_v43 = vmul.f32 0.2, %v895_v41 }
 0x560   :  { %v901_v44 = vsel %vm897_vm6, %v895_v41, %v899_v43 }
 0x561   :  { %v2401_v47 = vadd.f32 %v2245_v42, %v901_v44 }
 0x563   :  { %v905_v48 = vsel %vm225_vm1, %v2401_v47, -inf }
 0x564   :  { %v763_v49 = vpop.permute.xlu2 %762  ;;  %906 = vmax.xlane.f32.xlu2 %v905_v48 }
 0x565   :  { %v770_v32 = vadd.f32 %v769_v46, %v763_v49 }
 0x567   :  { %vm772_vm7 = vcmp.gt.f32.partialorder %v770_v32, 0.0  ;;  %v774_v50 = vmul.f32 0.2, %v770_v32 }
 0x569   :  { %v776_v52 = vsel %vm772_vm7, %v770_v32, %v774_v50 }
 0x56a   :  { %v702_v45 = vpop.permute.xlu0 %701  ;;  %v778_v53 = vadd.f32 %v2245_v42, %v776_v52 }
 0x56b   :  { %v710_v54 = vadd.f32 %v709_v51, %v702_v45 }
 0x56c   :  { %v780_v55 = vsel %vm225_vm1, %v778_v53, -inf }
 0x56d   :  { %vm712_vm8 = vcmp.gt.f32.partialorder %v710_v54, 0.0  ;;  %v714_v56 = vmul.f32 0.2, %v710_v54  ;;  %781 = vmax.xlane.f32.xlu2 %v780_v55 }
 0x56f   :  { %v716_v57 = vsel %vm712_vm8, %v710_v54, %v714_v56 }
 0x570   :  { %v718_v58 = vadd.f32 %v2245_v42, %v716_v57 }
 0x572   :  { %v720_v59 = vsel %vm225_vm1, %v718_v58, -inf }
 0x573   :  { %v707_v60 = vpop.permute.xlu1 %706  ;;  %721 = vmax.xlane.f32.xlu1 %v720_v59 }
 0x574   :  { %v711_v61 = vadd.f32 %v709_v51, %v707_v60  ;;  %v767_v62 = vpop.permute.xlu0 %766 }
 0x575   :  { %v771_v63 = vadd.f32 %v769_v46, %v767_v62 }
 0x576   :  { %vm713_vm12 = vcmp.gt.f32.partialorder %v711_v61, 0.0  ;;  %v715_v0 = vmul.f32 0.2, %v711_v61 }
 0x577   :  { %vm773_vm13 = vcmp.gt.f32.partialorder %v771_v63, 0.0  ;;  %v775_v2 = vmul.f32 0.2, %v771_v63 }
 0x578   :  { %v717_v3 = vsel %vm713_vm12, %v711_v61, %v715_v0 }
 0x579   :  { %v719_v4 = vadd.f32 %v2257_v1, %v717_v3  ;;  %v777_v5 = vsel %vm773_vm13, %v771_v63, %v775_v2 }
 0x57a   :  { %v779_v6 = vadd.f32 %v2257_v1, %v777_v5 }
 0x57b   :  { %v723_v7 = vsel %vm225_vm1, %v719_v4, -inf }
 0x57c   :  { %724 = vmax.xlane.f32.xlu2 %v723_v7  ;;  %v830_v8 = vpop.permute.xlu1 %829  ;;  %v783_v10 = vsel %vm225_vm1, %v779_v6, -inf }
 0x57d   :  { %v834_v11 = vadd.f32 %v832_v30, %v830_v8  ;;  %784 = vmax.xlane.f32.xlu0 %v783_v10 }
 0x57f   :  { %vm836_vm14 = vcmp.gt.f32.partialorder %v834_v11, 0.0  ;;  %v838_v9 = vmul.f32 0.2, %v834_v11 }
 0x581   :  { %v840_v12 = vsel %vm836_vm14, %v834_v11, %v838_v9 }
 0x582   :  { %v842_v13 = vadd.f32 %v2257_v1, %v840_v12 }
 0x584   :  { %v846_v14 = vsel %vm225_vm1, %v842_v13, -inf }
 0x585   :  { %847 = vmax.xlane.f32.xlu1 %v846_v14  ;;  %v892_v15 = vpop.permute.xlu1 %891 }
 0x586   :  { %v896_v16 = vadd.f32 %v894_v37, %v892_v15 }
 0x588   :  { %vm898_vm15 = vcmp.gt.f32.partialorder %v896_v16, 0.0  ;;  %v900_v17 = vmul.f32 0.2, %v896_v16 }
 0x58a   :  { %v902_v18 = vsel %vm898_vm15, %v896_v16, %v900_v17 }
 0x58b   :  { %v904_v19 = vadd.f32 %v2257_v1, %v902_v18 }
 0x58d   :  { %v908_v20 = vsel %vm225_vm1, %v904_v19, -inf }
 0x58e   :  { %909 = vmax.xlane.f32.xlu1 %v908_v20 }
 0x591   :  { %800 = vrot.lane.b32.xlu0 %v2376_v22, %s2097_s27 }
 0x594   :  { %924 = vrot.lane.b32.xlu2 %v2376_v22, %s2099_s1 }
 0x5a7   :  { %862 = vrot.lane.b32.xlu1 %v2376_v22, %s2100_s30 }
 0x5ce   :  { %v845_v21 = vpop.xlane.xlu0 %844 }
 0x5cf   :  { %v849_v23 = vsub.f32 %v2395_v38, %v845_v21 }
 0x5d1   :  { %v851_v24 = vmul.f32 1.442695, %v849_v23 }
 0x5d3   :  { %1967 = vpow2.f32 %v851_v24 }
 0x5d7   :  { %v907_v25 = vpop.xlane.xlu2 %906 }
 0x5d8   :  { %v911_v34 = vsub.f32 %v2401_v47, %v907_v25 }
 0x5d9   :  { %v2425_v26 = vpop.eup %1967 }
 0x5da   :  { %v855_v30 = vsel %vm225_vm1, %v2425_v26, 0.0  ;;  %v913_v37 = vmul.f32 1.442695, %v911_v34 }
 0x5db   :  { %856 = vadd.xlane.f32.xlu0 %v855_v30 }
 0x5e0   :  { %v782_v31 = vpop.xlane.xlu2 %781 }
 0x5e1   :  { %v786_v33 = vsub.f32 %v778_v53, %v782_v31 }
 0x5e3   :  { %v788_v35 = vmul.f32 1.442695, %v786_v33 }
 0x5e5   :  { %1969 = vpow2.f32 %v788_v35 }
 0x5e6   :  { %v722_v22 = vpop.xlane.xlu1 %721  ;;  %1971 = vpow2.f32 %v913_v37 }
 0x5e7   :  { %v726_v38 = vsub.f32 %v718_v58, %v722_v22 }
 0x5e9   :  { %v728_v41 = vmul.f32 1.442695, %v726_v38 }
 0x5eb   :  { %v1970_v39 = vpop.eup %1969  ;;  %1973 = vpow2.f32 %v728_v41 }
 0x5ec   :  { %v792_v40 = vsel %vm225_vm1, %v1970_v39, 0.0  ;;  %v1972_v48 = vpop.eup %1971 }
 0x5ed   :  { %793 = vadd.xlane.f32.xlu1 %v792_v40  ;;  %v917_v47 = vsel %vm225_vm1, %v1972_v48, 0.0 }
 0x5ef   :  { %v725_v43 = vpop.xlane.xlu2 %724 }
 0x5f0   :  { %v727_v44 = vsub.f32 %v719_v4, %v725_v43  ;;  %v785_v46 = vpop.xlane.xlu0 %784 }
 0x5f1   :  { %v787_v49 = vsub.f32 %v779_v6, %v785_v46  ;;  %v1974_v45 = vpop.eup %1973 }
 0x5f2   :  { %v730_v32 = vmul.f32 1.442695, %v727_v44  ;;  %v732_v5 = vsel %vm225_vm1, %v1974_v45, 0.0 }
 0x5f3   :  { %v790_v50 = vmul.f32 1.442695, %v787_v49 }
 0x5f4   :  { %1975 = vpow2.f32 %v730_v32 }
 0x5f5   :  { %1977 = vpow2.f32 %v790_v50  ;;  %918 = vadd.xlane.f32.xlu1 %v917_v47  ;;  %v1924_v47 = vld [vmem:[%s2738_s5 + $0x1] ss:$0 sm:$0xff] }
 0x5f7   :  { %v925_v51 = vpop.permute.xlu2 %924 }
 0x5f8   :  { %937 = vmatpush.bf16.msra.mxu3 %v925_v51  ;;  %v848_v52 = vpop.xlane.xlu1 %847 }
 0x5f9   :  { %v850_v53 = vsub.f32 %v842_v13, %v848_v52 }
 0x5fa   :  { %v1976_v54 = vpop.eup %1975 }
 0x5fb   :  { %v1978_v55 = vpop.eup %1977  ;;  %v738_v56 = vpack.c.bf16 %v1976_v54, %v1974_v45  ;;  %v853_v57 = vmul.f32 1.442695, %v850_v53  ;;  %v735_v59 = vsel %vm225_vm1, %v1976_v54, 0.0 }
 0x5fc   :  { %v795_v58 = vsel %vm225_vm1, %v1978_v55, 0.0  ;;  %v798_v3 = vpack.c.bf16 %v1978_v55, %v1970_v39 }
 0x5fd   :  { %1979 = vpow2.f32 %v853_v57  ;;  %796 = vadd.xlane.f32.xlu2 %v795_v58  ;;  %1790 = vmatmul.msk.bf16.vlgmr.msra.gmra.mxu2 %vm225_vm1, %v738_v56 }
 0x5fe   :  { %736 = vadd.xlane.f32.xlu1 %v735_v59 }
 0x601   :  { %v910_v60 = vpop.xlane.xlu1 %909 }
 0x602   :  { %v912_v61 = vsub.f32 %v904_v19, %v910_v60 }
 0x603   :  { %v1980_v62 = vpop.eup %1979  ;;  %v801_v63 = vpop.permute.xlu0 %800 }
 0x604   :  { %v915_v0 = vmul.f32 1.442695, %v912_v61  ;;  %813 = vmatpush.bf16.msra.mxu1 %v801_v63  ;;  %v858_v2 = vsel %vm225_vm1, %v1980_v62, 0.0  ;;  %v861_v10 = vpack.c.bf16 %v1980_v62, %v2425_v26 }
 0x605   :  { %859 = vadd.xlane.f32.xlu2 %v858_v2 }
 0x606   :  { %1981 = vpow2.f32 %v915_v0 }
 0x607   :  { %1791 = vmatmul.msk.bf16.vlgmr.msra.gmra.mxu1 %vm225_vm1, %v798_v3  ;;  %v1877_v3 = vld [vmem:[#allocation2 + $0xb8] sm:$0xff] }
 0x608   :  { %1117 = vmatpush.bf16.msrb.mxu1 %v1877_v3 }
 0x60c   :  { %v1982_v4 = vpop.eup %1981 }
 0x60d   :  { %v923_v6 = vpack.c.bf16 %v1982_v4, %v1972_v48  ;;  %733 = vadd.xlane.f32.xlu2 %v732_v5  ;;  %v920_v7 = vsel %vm225_vm1, %v1982_v4, 0.0  ;;  %v1876_v4 = vld [vmem:[#allocation2 + $0xb0] sm:$0xff]  ;;  %v1875_v5 = vld [vmem:[#allocation2 + $0xa8] sm:$0xff] }
 0x60e   :  { %921 = vadd.xlane.f32.xlu0 %v920_v7  ;;  %1118 = vmatpush.bf16.msrb.mxu1 %v1876_v4  ;;  %v1873_v7 = vld [vmem:[#allocation2 + $0x98] sm:$0xff] }
 0x60f   :  { %1793 = vmatmul.msk.bf16.vlgmr.msra.gmra.mxu3 %vm225_vm1, %v923_v6  ;;  %v1874_v6 = vld [vmem:[#allocation2 + $0xa0] sm:$0xff] }
 0x612   :  { %1119 = vmatpush.bf16.msrb.mxu1 %v1875_v5 }
 0x616   :  { %1120 = vmatpush.bf16.msrb.mxu1 %v1874_v6  ;;  %v1830_v6 = vld [vmem:[%s2737_s4 + $0x108] sm:$0xff] }
 0x619   :  { %v863_v8 = vpop.permute.xlu1 %862 }
 0x61a   :  { %875 = vmatpush.bf16.msrb.mxu2 %v863_v8  ;;  %1121 = vmatpush.bf16.msrb.mxu1 %v1873_v7  ;;  %v1872_v8 = vld [vmem:[#allocation2 + $0x90] sm:$0xff] }
 0x61d   :  { %1792 = vmatmul.msk.bf16.vlgmr.msrb.gmra.mxu2 %vm225_vm1, %v861_v10 }
 0x61e   :  { %1122 = vmatpush.bf16.msrb.mxu1 %v1872_v8 }
 0x64e   :  { %v857_v15 = vpop.xlane.xlu0 %856 }
 0x660   :  { %v794_v11 = vpop.xlane.xlu1 %793 }
 0x661   :  { %1983 = vrcp.f32 %v794_v11 }
 0x667   :  { %v1984_v12 = vpop.eup %1983 }
 0x668   :  { %v919_v35 = vpop.xlane.xlu1 %918 }
 0x670   :  { %v797_v9 = vpop.xlane.xlu2 %796 }
 0x671   :  { %1985 = vrcp.f32 %v797_v9  ;;  %v737_v43 = vpop.xlane.xlu1 %736 }
 0x677   :  { %v1986_v16 = vpop.eup %1985 }
 0x678   :  { %v860_v30 = vpop.xlane.xlu2 %859 }
 0x680   :  { %v752_v19 = vpop.f32.mrf.mxu2  ;;  %v734_v41 = vpop.xlane.xlu2 %733 }
 0x681   :  { %v922_v20 = vpop.xlane.xlu0 %921 }
 0x682   :  { %1987 = vrcp.f32 %v922_v20 }
 0x683   :  { %1989 = vrcp.f32 %v857_v15  ;;  %v1871_v15 = vld [vmem:[#allocation2 + $0x88] sm:$0xff] }
 0x684   :  { %v815_v13 = vpop.f32.mrf.mxu1  ;;  %1991 = vrcp.f32 %v860_v30  ;;  %1123 = vmatpush.bf16.msrb.mxu1 %v1871_v15  ;;  %v1845_v15 = vld [vmem:[%s2736_s3 + $0x8] sm:$0xf] }
 0x685   :  { %v822_v14 = vmul.f32 %v1984_v12, %v815_v13  ;;  %1993 = vrcp.f32 %v919_v35  ;;  %v1841_v35 = vld [vmem:[%s2737_s4 + $0x160] sm:$0xff] }
 0x686   :  { %1995 = vrcp.f32 %v737_v43 }
 0x687   :  { %950 = vrot.lane.b32.xlu0 %v822_v14, %s2102_s2  ;;  %1997 = vrcp.f32 %v734_v41 }
 0x688   :  { %v754_v23 = vpop.f32.mrf.mxu2  ;;  %v1988_v24 = vpop.eup %1987 }
 0x689   :  { %v1990_v31 = vpop.eup %1989 }
 0x68a   :  { %v1992_v37 = vpop.eup %1991 }
 0x68b   :  { %v1994_v38 = vpop.eup %1993 }
 0x68c   :  { %v817_v17 = vpop.f32.mrf.mxu1  ;;  %v1996_v48 = vpop.eup %1995 }
 0x68d   :  { %v823_v18 = vmul.f32 %v1986_v16, %v817_v17  ;;  %v760_v49 = vmul.f32 %v1996_v48, %v754_v23  ;;  %v1998_v45 = vpop.eup %1997 }
 0x68e   :  { %v759_v56 = vmul.f32 %v1998_v45, %v752_v19 }
 0x68f   :  { %952 = vrot.lane.b32.xlu2 %v823_v18, %s2102_s2  ;;  %v1870_v18 = vld [vmem:[#allocation2 + $0x80] sm:$0xff] }
 0x690   :  { %1124 = vmatpush.bf16.msrb.mxu1 %v1870_v18 }
 0x692   :  { %v939_v21 = vpop.f32.mrf.mxu3 }
 0x693   :  { %v946_v40 = vmul.f32 %v1994_v38, %v939_v21  ;;  %v1839_v38 = vld [vmem:[%s2737_s4 + $0x150] sm:$0xff] }
 0x69a   :  { %v941_v25 = vpop.f32.mrf.mxu3 }
 0x69b   :  { %v947_v26 = vmul.f32 %v1988_v24, %v941_v25  ;;  %v1844_v25 = vld [vmem:[%s2737_s4 + $0x178] sm:$0xff] }
 0x69c   :  { %1148 = vmatpush.msra.mxu0 %v1844_v25 }
 0x69d   :  { %968 = vrot.lane.b32.xlu2 %v947_v26, %s2103_s14  ;;  %v1843_v26 = vld [vmem:[%s2737_s4 + $0x170] sm:$0xff] }
 0x69e   :  { %1149 = vmatpush.msra.mxu0 %v1843_v26 }
 0x6a0   :  { %v877_v33 = vpop.f32.mrf.mxu2 }
 0x6a1   :  { %v884_v34 = vmul.f32 %v1990_v31, %v877_v33  ;;  %v1842_v31 = vld [vmem:[%s2737_s4 + $0x168] sm:$0xff] }
 0x6a2   :  { %1150 = vmatpush.msra.mxu0 %v1842_v31 }
 0x6a3   :  { %958 = vrot.lane.b32.xlu1 %v884_v34, %s2101_s13 }
 0x6a4   :  { %1151 = vmatpush.msra.mxu0 %v1841_v35 }
 0x6a8   :  { %v879_v22 = vpop.f32.mrf.mxu2 }
 0x6a9   :  { %v885_v39 = vmul.f32 %v1992_v37, %v879_v22  ;;  %v1840_v22 = vld [vmem:[%s2737_s4 + $0x158] sm:$0xff] }
 0x6aa   :  { %1152 = vmatpush.msra.mxu0 %v1840_v22 }
 0x6ab   :  { %960 = vrot.lane.b32.xlu0 %v885_v39, %s2101_s13 }
 0x6ac   :  { %1153 = vmatpush.msra.mxu0 %v1839_v38 }
 0x6b3   :  { %966 = vrot.lane.b32.xlu0 %v946_v40, %s2103_s14 }
 0x6e9   :  { %v953_v46 = vpop.permute.xlu2 %952 }
 0x6ea   :  { %v973_v32 = vsel %vm478_vm9, %v760_v49, %v953_v46  ;;  %v1837_v49 = vld [vmem:[%s2737_s4 + $0x140] sm:$0xff] }
 0x6f7   :  { %v969_v51 = vpop.permute.xlu2 %968 }
 0x6f9   :  { %v951_v44 = vpop.permute.xlu0 %950 }
 0x6fa   :  { %v972_v58 = vsel %vm478_vm9, %v759_v56, %v951_v44  ;;  %v1838_v44 = vld [vmem:[%s2737_s4 + $0x148] sm:$0xff] }
 0x6fb   :  { %1154 = vmatpush.msra.mxu0 %v1838_v44 }
 0x6fd   :  { %1155 = vmatpush.msra.mxu0 %v1837_v49 }
 0x715   :  { %v959_v57 = vpop.permute.xlu1 %958 }
 0x716   :  { %v974_v59 = vsel %vm225_vm1, %v972_v58, %v959_v57  ;;  %v1926_v57 = vld [vmem:[%s2740_s7 + $0x1] ss:$0 sm:$0xff] }
 0x71d   :  { %v961_v50 = vpop.permute.xlu0 %960 }
 0x71e   :  { %v975_v52 = vsel %vm225_vm1, %v973_v32, %v961_v50  ;;  %v1925_v50 = vld [vmem:[%s2739_s6 + $0x1] ss:$0 sm:$0xff] }
 0x71f   :  { %v977_v53 = vsel %vm483_vm10, %v975_v52, %v969_v51  ;;  %v1836_v52 = vld [vmem:[%s2737_s4 + $0x138] sm:$0xff] }
 0x720   :  { %v979_v54 = vsel %vm486_vm11, %v977_v53, 0.0  ;;  %1156 = vmatpush.msra.mxu0 %v1836_v52 }
 0x721   :  { %v2455_v55 = vadd.f32 %v1924_v47, %v979_v54  ;;  %v1835_v54 = vld [vmem:[%s2737_s4 + $0x130] sm:$0xff] }
 0x722   :  { %1157 = vmatpush.msra.mxu0 %v1835_v54 }
 0x723   :  { %989 = vadd.xlane.f32.xlu0 %v2455_v55  ;;  %v994_v2 = vmul.f32 %v2455_v55, %v2455_v55 }
 0x725   :  { %v967_v60 = vpop.permute.xlu0 %966 }
 0x726   :  { %v976_v61 = vsel %vm483_vm10, %v974_v59, %v967_v60  ;;  %v1834_v59 = vld [vmem:[%s2737_s4 + $0x128] sm:$0xff] }
 0x727   :  { %v978_v62 = vsel %vm486_vm11, %v976_v61, 0.0  ;;  %1158 = vmatpush.msra.mxu0 %v1834_v59 }
 0x728   :  { %v2462_v63 = vadd.f32 %v1924_v47, %v978_v62  ;;  %v1833_v62 = vld [vmem:[%s2737_s4 + $0x120] sm:$0xff] }
 0x729   :  { %1159 = vmatpush.msra.mxu0 %v1833_v62 }
 0x72a   :  { %987 = vadd.xlane.f32.xlu1 %v2462_v63  ;;  %v993_v0 = vmul.f32 %v2462_v63, %v2462_v63 }
 0x72c   :  { %995 = vadd.xlane.f32.xlu2 %v993_v0 }
 0x732   :  { %997 = vadd.xlane.f32.xlu1 %v994_v2  ;;  %v1832_v2 = vld [vmem:[%s2737_s4 + $0x118] sm:$0xff] }
 0x733   :  { %1160 = vmatpush.msra.mxu0 %v1832_v2 }
 0x796   :  { %v990_v9 = vpop.xlane.xlu0 %989 }
 0x797   :  { %v992_v16 = vmul.f32 0.03125, %v990_v9  ;;  %v1829_v9 = vld [vmem:[%s2737_s4 + $0x100] sm:$0xff] }
 0x799   :  { %v1002_v21 = vmul.f32 %v992_v16, %v992_v16  ;;  %v1006_v60 = vsub.f32 %v2455_v55, %v992_v16  ;;  %v1831_v55 = vld [vmem:[%s2737_s4 + $0x110] sm:$0xff] }
 0x79a   :  { %1161 = vmatpush.msra.mxu0 %v1831_v55 }
 0x79c   :  { %1162 = vmatpush.msra.mxu0 %v1830_v6 }
 0x79d   :  { %v988_v10 = vpop.xlane.xlu1 %987 }
 0x79e   :  { %v991_v11 = vmul.f32 0.03125, %v988_v10  ;;  %1163 = vmatpush.msra.mxu0 %v1829_v9 }
 0x79f   :  { %v996_v12 = vpop.xlane.xlu2 %995 }
 0x7a0   :  { %v1001_v13 = vmul.f32 %v991_v11, %v991_v11  ;;  %v999_v14 = vmul.f32 0.03125, %v996_v12  ;;  %v1005_v32 = vsub.f32 %v2462_v63, %v991_v11 }
 0x7a2   :  { %v1003_v17 = vsub.f32 %v999_v14, %v1001_v13 }
 0x7a4   :  { %v1007_v19 = vadd.f32 1e-05, %v1003_v17 }
 0x7a5   :  { %v998_v20 = vpop.xlane.xlu1 %997 }
 0x7a6   :  { %1999 = vrsqrt.f32 %v1007_v19  ;;  %v1000_v23 = vmul.f32 0.03125, %v998_v20  ;;  %vm1015_vm2 = vweird.f32 %v1007_v19 }
 0x7a8   :  { %v1004_v24 = vsub.f32 %v1000_v23, %v1002_v21 }
 0x7aa   :  { %v1008_v30 = vadd.f32 1e-05, %v1004_v24 }
 0x7ac   :  { %v2000_v33 = vpop.eup %1999  ;;  %2001 = vrsqrt.f32 %v1008_v30  ;;  %vm1025_vm5 = vweird.f32 %v1008_v30 }
 0x7ad   :  { %v1010_v34 = vmul.f32 %v2000_v33, %v1007_v19  ;;  %vm1016_vm0 = vweird.f32 %v2000_v33 }
 0x7ae   :  { %vm1017_vm3 = vmor %vm1015_vm2, %vm1016_vm0 }
 0x7af   :  { %v1011_v37 = vmul.f32 %v2000_v33, %v1010_v34 }
 0x7b1   :  { %v1012_v39 = vmul.f32 0.5, %v1011_v37 }
 0x7b2   :  { %v2002_v40 = vpop.eup %2001 }
 0x7b3   :  { %v1013_v41 = vsub.f32 1.5, %v1012_v39  ;;  %v1020_v43 = vmul.f32 %v2002_v40, %v1008_v30  ;;  %vm1026_vm4 = vweird.f32 %v2002_v40 }
 0x7b4   :  { %vm1027_vm6 = vmor %vm1025_vm5, %vm1026_vm4 }
 0x7b5   :  { %v1014_v46 = vmul.f32 %v2000_v33, %v1013_v41  ;;  %v1021_v48 = vmul.f32 %v2002_v40, %v1020_v43 }
 0x7b7   :  { %v1018_v47 = vsel %vm1017_vm3, %v2000_v33, %v1014_v46  ;;  %v1022_v51 = vmul.f32 0.5, %v1021_v48 }
 0x7b8   :  { %v1029_v45 = vmul.f32 %v1018_v47, %v1005_v32 }
 0x7b9   :  { %v1023_v53 = vsub.f32 1.5, %v1022_v51 }
 0x7ba   :  { %v1036_v56 = vmul.f32 %v1925_v50, %v1029_v45 }
 0x7bb   :  { %v1024_v58 = vmul.f32 %v2002_v40, %v1023_v53 }
 0x7bc   :  { %v1043_v0 = vadd.f32 %v1926_v57, %v1036_v56 }
 0x7bd   :  { %v1028_v61 = vsel %vm1027_vm6, %v2002_v40, %v1024_v58 }
 0x7be   :  { %v1030_v63 = vmul.f32 %v1028_v61, %v1006_v60  ;;  %v1047_v5 = vmul.f32 0.1, %v1043_v0  ;;  %vm1045_vm7 = vcmp.gt.f32.partialorder %v1043_v0, 0.0 }
 0x7c0   :  { %v1037_v3 = vmul.f32 %v1925_v50, %v1030_v63  ;;  %v1049_v8 = vsel %vm1045_vm7, %v1043_v0, %v1047_v5 }
 0x7c2   :  { %v1044_v4 = vadd.f32 %v1926_v57, %v1037_v3 }
 0x7c4   :  { %vm1046_vm8 = vcmp.gt.f32.partialorder %v1044_v4, 0.0  ;;  %v1048_v7 = vmul.f32 0.1, %v1044_v4 }
 0x7c6   :  { %v1050_v10 = vsel %vm1046_vm8, %v1044_v4, %v1048_v7 }
 0x7c7   :  { %v1051_v11 = vpack.c.bf16 %v1050_v10, %v1049_v8 }
 0x7c9   :  { %1125 = vmatmul.bf16.vlgmr.msrb.gmra.mxu1 %v1051_v11 }
 0x846   :  { %v1126_v12 = vpop.f32.mrf.mxu1 }
 0x847   :  { %1164 = vmatmul.f32.vlgmr.msra.gmra.mxu0 %v1126_v12 }
 0x84e   :  { %v1128_v13 = vpop.f32.mrf.mxu1 }
 0x84f   :  { %v2525_v14 = vpack.c.bf16 %v1128_v13, %v1126_v12  ;;  %1167 = vmatmul.f32.gmra.mxu0 %v1128_v13  ;;  %1187 = vmatpush.xpose.msra.mxu2 %v1128_v13 }
 0x851   :  { %1244 = vmatpush.bf16.msrb.mxu3 %v2525_v14 }
 0x853   :  { %1188 = vmatpush.xpose.msra.mxu2 %v1126_v12 }
 0x856   :  { %1189 = vmatmul.f32.vlgmr.msra.gmra.mxu2 %v1845_v15 }
 0x8c4   :  { %v1165_v16 = vpop.f32.mrf.mxu0 }
 0x8c5   :  { %1256 = vperm.xlu1 %1909, %v1165_v16   ;;  %1195 = vperm.xlu0 %1908, %v1165_v16  }
 0x8cc   :  { %v1168_v17 = vpop.f32.mrf.mxu0 }
 0x8cd   :  { %1910 = vset.pattern.permute.xlu1 %v2094_v27  ;;  %1915 = vset.pattern.permute.xlu0 %v2098_v36 }
 0x8ce   :  { %1200 = vperm.xlu2 %1912, %v1168_v17   ;;  %1319 = vperm.xlu1 %1910, %v1165_v16  }
 0x8cf   :  { %1385 = vperm.xlu0 %1915, %v1168_v17  }
 0x8d6   :  { %1913 = vset.pattern.permute.xlu2 %v2095_v28  ;;  %1911 = vset.pattern.permute.xlu1 %v2098_v36 }
 0x8d7   :  { %1260 = vperm.xlu2 %1913, %v1168_v17   ;;  %1381 = vperm.xlu1 %1911, %v1165_v16  }
 0x8d8   :  { %1917 = vset.pattern.permute.xlu0 %v2096_v29 }
 0x8d9   :  { %v1190_v19 = vpop.f32.mrf.mxu2 }
 0x8da   :  { %v1263_v21 = vperm.slane %v1190_v19, 1  ;;  %v1203_v23 = vperm.slane %v1190_v19, 0  ;;  %v1326_v34 = vperm.slane %v1190_v19, 2  ;;  %v1388_v47 = vperm.slane %v1190_v19, 3 }
 0x8df   :  { %1914 = vset.pattern.permute.xlu2 %v2094_v27  ;;  %1916 = vset.pattern.permute.xlu1 %v2096_v29 }
 0x8e0   :  { %1323 = vperm.xlu2 %1914, %v1168_v17  }
 0x8e8   :  { %1918 = vset.pattern.permute.xlu2 %v2095_v28 }
 0x928   :  { %v1201_v18 = vpop.permute.xlu2 %1200 }
 0x929   :  { %v1205_v59 = vadd.f32 %v1203_v23, %v1201_v18 }
 0x92b   :  { %v1209_v0 = vmul.f32 0.2, %v1205_v59  ;;  %vm1207_vm4 = vcmp.gt.f32.partialorder %v1205_v59, 0.0 }
 0x92d   :  { %v1211_v6 = vsel %vm1207_vm4, %v1205_v59, %v1209_v0 }
 0x92e   :  { %v1213_v8 = vadd.f32 %v2257_v1, %v1211_v6 }
 0x930   :  { %v1217_v11 = vsel %vm225_vm1, %v1213_v8, -inf }
 0x931   :  { %v1261_v20 = vpop.permute.xlu2 %1260 }
 0x932   :  { %v1265_v26 = vadd.f32 %v1263_v21, %v1261_v20 }
 0x934   :  { %v1269_v27 = vmul.f32 0.2, %v1265_v26  ;;  %vm1267_vm14 = vcmp.gt.f32.partialorder %v1265_v26, 0.0 }
 0x936   :  { %v1271_v46 = vsel %vm1267_vm14, %v1265_v26, %v1269_v27 }
 0x937   :  { %v1257_v24 = vpop.permute.xlu1 %1256  ;;  %v1196_v25 = vpop.permute.xlu0 %1195  ;;  %v1273_v32 = vadd.f32 %v2257_v1, %v1271_v46 }
 0x938   :  { %v1264_v36 = vadd.f32 %v1263_v21, %v1257_v24  ;;  %v1204_v30 = vadd.f32 %v1203_v23, %v1196_v25 }
 0x939   :  { %v1277_v53 = vsel %vm225_vm1, %v1273_v32, -inf }
 0x93a   :  { %vm1266_vm12 = vcmp.gt.f32.partialorder %v1264_v36, 0.0  ;;  %v1268_v31 = vmul.f32 0.2, %v1264_v36  ;;  %vm1206_vm13 = vcmp.gt.f32.partialorder %v1204_v30, 0.0  ;;  %v1208_v33 = vmul.f32 0.2, %v1204_v30  ;;  %v1324_v22 = vpop.permute.xlu2 %1323 }
 0x93b   :  { %v1328_v43 = vadd.f32 %v1326_v34, %v1324_v22 }
 0x93c   :  { %v1270_v35 = vsel %vm1266_vm12, %v1264_v36, %v1268_v31  ;;  %v1210_v37 = vsel %vm1206_vm13, %v1204_v30, %v1208_v33 }
 0x93d   :  { %v1272_v39 = vadd.f32 %v2245_v42, %v1270_v35  ;;  %v2541_v38 = vadd.f32 %v2245_v42, %v1210_v37  ;;  %v1332_v50 = vmul.f32 0.2, %v1328_v43  ;;  %vm1330_vm0 = vcmp.gt.f32.partialorder %v1328_v43, 0.0 }
 0x93f   :  { %v1274_v40 = vsel %vm225_vm1, %v1272_v39, -inf  ;;  %v1214_v41 = vsel %vm225_vm1, %v2541_v38, -inf  ;;  %v1334_v57 = vsel %vm1330_vm0, %v1328_v43, %v1332_v50 }
 0x940   :  { %v1320_v44 = vpop.permute.xlu1 %1319  ;;  %1275 = vmax.xlane.f32.xlu0 %v1274_v40  ;;  %1215 = vmax.xlane.f32.xlu2 %v1214_v41  ;;  %v1336_v61 = vadd.f32 %v2257_v1, %v1334_v57 }
 0x941   :  { %v1327_v48 = vadd.f32 %v1326_v34, %v1320_v44  ;;  %v1386_v51 = vpop.permute.xlu0 %1385 }
 0x942   :  { %v1390_v54 = vadd.f32 %v1388_v47, %v1386_v51  ;;  %v1340_v3 = vsel %vm225_vm1, %v1336_v61, -inf }
 0x943   :  { %vm1329_vm15 = vcmp.gt.f32.partialorder %v1327_v48, 0.0  ;;  %v1331_v49 = vmul.f32 0.2, %v1327_v48 }
 0x944   :  { %v1394_v62 = vmul.f32 0.2, %v1390_v54  ;;  %vm1392_vm3 = vcmp.gt.f32.partialorder %v1390_v54, 0.0 }
 0x945   :  { %v1333_v52 = vsel %vm1329_vm15, %v1327_v48, %v1331_v49 }
 0x946   :  { %v1335_v45 = vadd.f32 %v2245_v42, %v1333_v52  ;;  %v1396_v4 = vsel %vm1392_vm3, %v1390_v54, %v1394_v62 }
 0x947   :  { %v1398_v7 = vadd.f32 %v2257_v1, %v1396_v4 }
 0x948   :  { %1278 = vmax.xlane.f32.xlu2 %v1277_v53  ;;  %v1337_v56 = vsel %vm225_vm1, %v1335_v45, -inf }
 0x949   :  { %v1382_v58 = vpop.permute.xlu1 %1381  ;;  %1338 = vmax.xlane.f32.xlu1 %v1337_v56  ;;  %v1402_v10 = vsel %vm225_vm1, %v1398_v7, -inf }
 0x94a   :  { %v1389_v60 = vadd.f32 %v1388_v47, %v1382_v58 }
 0x94c   :  { %vm1391_vm2 = vcmp.gt.f32.partialorder %v1389_v60, 0.0  ;;  %v1393_v63 = vmul.f32 0.2, %v1389_v60 }
 0x94e   :  { %v1395_v2 = vsel %vm1391_vm2, %v1389_v60, %v1393_v63 }
 0x94f   :  { %v1397_v55 = vadd.f32 %v2245_v42, %v1395_v2 }
 0x950   :  { %1341 = vmax.xlane.f32.xlu2 %v1340_v3 }
 0x951   :  { %v1399_v5 = vsel %vm225_vm1, %v1397_v55, -inf }
 0x952   :  { %1400 = vmax.xlane.f32.xlu1 %v1399_v5 }
 0x954   :  { %1294 = vrot.lane.b32.xlu0 %v2525_v14, %s2097_s27 }
 0x958   :  { %1403 = vmax.xlane.f32.xlu2 %v1402_v10 }
 0x95a   :  { %1218 = vmax.xlane.f32.xlu1 %v1217_v11 }
 0x970   :  { %1418 = vrot.lane.b32.xlu2 %v2525_v14, %s2099_s1 }
 0x973   :  { %1356 = vrot.lane.b32.xlu1 %v2525_v14, %s2100_s30 }
 0x9b3   :  { %v1276_v42 = vpop.xlane.xlu0 %1275  ;;  %v1216_v9 = vpop.xlane.xlu2 %1215 }
 0x9b4   :  { %v1280_v12 = vsub.f32 %v1272_v39, %v1276_v42  ;;  %v1220_v34 = vsub.f32 %v2541_v38, %v1216_v9 }
 0x9b6   :  { %v1282_v13 = vmul.f32 1.442695, %v1280_v12  ;;  %v1222_v39 = vmul.f32 1.442695, %v1220_v34 }
 0x9b8   :  { %2003 = vpow2.f32 %v1282_v13 }
 0x9bb   :  { %v1279_v15 = vpop.xlane.xlu2 %1278 }
 0x9bc   :  { %v1281_v16 = vsub.f32 %v1273_v32, %v1279_v15  ;;  %v1339_v1 = vpop.xlane.xlu1 %1338 }
 0x9bd   :  { %v1343_v17 = vsub.f32 %v1335_v45, %v1339_v1 }
 0x9be   :  { %v2004_v18 = vpop.eup %2003  ;;  %v1284_v19 = vmul.f32 1.442695, %v1281_v16 }
 0x9bf   :  { %v1345_v20 = vmul.f32 1.442695, %v1343_v17  ;;  %v1286_v21 = vsel %vm225_vm1, %v2004_v18, 0.0 }
 0x9c0   :  { %2005 = vpow2.f32 %v1284_v19  ;;  %1287 = vadd.xlane.f32.xlu2 %v1286_v21 }
 0x9c1   :  { %2007 = vpow2.f32 %v1345_v20 }
 0x9c3   :  { %v1342_v23 = vpop.xlane.xlu2 %1341 }
 0x9c4   :  { %v1344_v31 = vsub.f32 %v1336_v61, %v1342_v23 }
 0x9c5   :  { %v1401_v24 = vpop.xlane.xlu1 %1400 }
 0x9c6   :  { %v2006_v14 = vpop.eup %2005  ;;  %v1405_v25 = vsub.f32 %v1397_v55, %v1401_v24  ;;  %v1295_v26 = vpop.permute.xlu0 %1294  ;;  %v1347_v35 = vmul.f32 1.442695, %v1344_v31 }
 0x9c7   :  { %v2008_v36 = vpop.eup %2007  ;;  %v1292_v30 = vpack.c.bf16 %v2006_v14, %v2004_v18  ;;  %1307 = vmatpush.bf16.msrb.mxu2 %v1295_v26  ;;  %v1289_v48 = vsel %vm225_vm1, %v2006_v14, 0.0 }
 0x9c8   :  { %v1407_v33 = vmul.f32 1.442695, %v1405_v25  ;;  %v1349_v27 = vsel %vm225_vm1, %v2008_v36, 0.0 }
 0x9c9   :  { %1350 = vadd.xlane.f32.xlu0 %v1349_v27 }
 0x9ca   :  { %2009 = vpow2.f32 %v1407_v33  ;;  %1847 = vmatmul.msk.bf16.vlgmr.msrb.gmra.mxu2 %vm225_vm1, %v1292_v30  ;;  %v1927_v33 = vld [vmem:[%s2738_s5 + $0x2] ss:$0 sm:$0xff]  ;;  %s1695_s5 = sshll.u32 %s2745_s12, 4  ;;  %s1696_s5 = int_to_ptr.hbm [resolvable:$true] %s1695_s5 }
 0x9cb   :  { %v1404_v37 = vpop.xlane.xlu2 %1403  ;;  %2011 = vpow2.f32 %v1347_v35 }
 0x9cc   :  { %v1406_v22 = vsub.f32 %v1398_v7, %v1404_v37 }
 0x9cd   :  { %v1219_v40 = vpop.xlane.xlu1 %1218 }
 0x9ce   :  { %v1409_v41 = vmul.f32 1.442695, %v1406_v22  ;;  %v1221_v43 = vsub.f32 %v1213_v8, %v1219_v40 }
 0x9d0   :  { %v2010_v44 = vpop.eup %2009  ;;  %2013 = vpow2.f32 %v1409_v41  ;;  %v1224_v46 = vmul.f32 1.442695, %v1221_v43 }
 0x9d1   :  { %2015 = vpow2.f32 %v1222_v39  ;;  %1290 = vadd.xlane.f32.xlu0 %v1289_v48  ;;  %v1411_v38 = vsel %vm225_vm1, %v2010_v44, 0.0  ;;  %v2012_v32 = vpop.eup %2011 }
 0x9d2   :  { %2017 = vpow2.f32 %v1224_v46  ;;  %1412 = vadd.xlane.f32.xlu1 %v1411_v38  ;;  %v1352_v56 = vsel %vm225_vm1, %v2012_v32, 0.0  ;;  %v1355_v59 = vpack.c.bf16 %v2012_v32, %v2008_v36  ;;  %v1570_v32 = vld [vmem:[%s2742_s9 + $0x8] sm:$0xff] }
 0x9d3   :  { %v1419_v49 = vpop.permute.xlu2 %1418 }
 0x9d4   :  { %1431 = vmatpush.bf16.msra.mxu1 %v1419_v49 }
 0x9d6   :  { %v2014_v50 = vpop.eup %2013 }
 0x9d7   :  { %v2016_v47 = vpop.eup %2015  ;;  %v1417_v51 = vpack.c.bf16 %v2014_v50, %v2010_v44  ;;  %v1414_v52 = vsel %vm225_vm1, %v2014_v50, 0.0 }
 0x9d8   :  { %v2018_v45 = vpop.eup %2017  ;;  %v1226_v57 = vsel %vm225_vm1, %v2016_v47, 0.0 }
 0x9d9   :  { %v1232_v53 = vpack.c.bf16 %v2018_v45, %v2016_v47  ;;  %1415 = vadd.xlane.f32.xlu0 %v1414_v52  ;;  %1849 = vmatmul.msk.bf16.vlgmr.msra.gmra.mxu1 %vm225_vm1, %v1417_v51  ;;  %v1229_v54 = vsel %vm225_vm1, %v2018_v45, 0.0  ;;  %v1569_v47 = vld [vmem:[%s2742_s9] sm:$0xff] }
 0x9da   :  { %1230 = vadd.xlane.f32.xlu2 %v1229_v54  ;;  %1353 = vadd.xlane.f32.xlu1 %v1352_v56 }
 0x9db   :  { %1846 = vmatmul.msk.bf16.vlgmr.msrb.gmra.mxu3 %vm225_vm1, %v1232_v53 }
 0x9e1   :  { %1227 = vadd.xlane.f32.xlu0 %v1226_v57 }
 0x9e5   :  { %v1357_v58 = vpop.permute.xlu1 %1356 }
 0x9e6   :  { %1369 = vmatpush.bf16.msra.mxu3 %v1357_v58  ;;  %v1626_v58 = vld [vmem:[%s2743_s10 + $0x78] sm:$0xff] }
 0x9e7   :  { %1647 = vmatpush.msrb.mxu0 %v1626_v58  ;;  %v1545_v58 = vld [vmem:[%s2741_s8] sm:$0x3] }
 0x9eb   :  { %1848 = vmatmul.msk.bf16.vlgmr.msra.gmra.mxu3 %vm225_vm1, %v1355_v59 }
 0xa33   :  { %v1288_v61 = vpop.xlane.xlu2 %1287 }
 0xa34   :  { %2019 = vrcp.f32 %v1288_v61 }
 0xa3a   :  { %v2020_v63 = vpop.eup %2019 }
 0xa3c   :  { %v1351_v60 = vpop.xlane.xlu0 %1350 }
 0xa44   :  { %v1291_v62 = vpop.xlane.xlu0 %1290 }
 0xa45   :  { %v1413_v0 = vpop.xlane.xlu1 %1412  ;;  %2021 = vrcp.f32 %v1291_v62  ;;  %v1623_v62 = vld [vmem:[%s2743_s10 + $0x60] sm:$0xff] }
 0xa46   :  { %2023 = vrcp.f32 %v1413_v0 }
 0xa4b   :  { %v2022_v55 = vpop.eup %2021 }
 0xa4c   :  { %v1416_v4 = vpop.xlane.xlu0 %1415  ;;  %v2024_v6 = vpop.eup %2023 }
 0xa4d   :  { %v1309_v2 = vpop.f32.mrf.mxu2  ;;  %2025 = vrcp.f32 %v1416_v4  ;;  %v1354_v15 = vpop.xlane.xlu1 %1353 }
 0xa4e   :  { %v1316_v3 = vmul.f32 %v2020_v63, %v1309_v2  ;;  %2027 = vrcp.f32 %v1354_v15  ;;  %v1231_v21 = vpop.xlane.xlu2 %1230  ;;  %v1622_v63 = vld [vmem:[%s2743_s10 + $0x58] sm:$0xff]  ;;  %v1621_v2 = vld [vmem:[%s2743_s10 + $0x50] sm:$0xff] }
 0xa4f   :  { %2029 = vrcp.f32 %v1351_v60 }
 0xa50   :  { %1444 = vrot.lane.b32.xlu0 %v1316_v3, %s2102_s2  ;;  %2031 = vrcp.f32 %v1231_v21  ;;  %v1929_v21 = vld [vmem:[%s2740_s7 + $0x2] ss:$0 sm:$0xff] }
 0xa53   :  { %v2026_v11 = vpop.eup %2025 }
 0xa54   :  { %v2028_v1 = vpop.eup %2027  ;;  %v1228_v23 = vpop.xlane.xlu0 %1227 }
 0xa55   :  { %v1311_v5 = vpop.f32.mrf.mxu2  ;;  %v2030_v19 = vpop.eup %2029  ;;  %2033 = vrcp.f32 %v1228_v23 }
 0xa56   :  { %v1317_v7 = vmul.f32 %v2022_v55, %v1311_v5  ;;  %v1433_v8 = vpop.f32.mrf.mxu1  ;;  %v2032_v14 = vpop.eup %2031  ;;  %v1620_v55 = vld [vmem:[%s2743_s10 + $0x48] sm:$0xff] }
 0xa57   :  { %v1440_v10 = vmul.f32 %v2024_v6, %v1433_v8  ;;  %v1619_v8 = vld [vmem:[%s2743_s10 + $0x40] sm:$0xff] }
 0xa58   :  { %1446 = vrot.lane.b32.xlu1 %v1317_v7, %s2102_s2 }
 0xa59   :  { %1460 = vrot.lane.b32.xlu0 %v1440_v10, %s2103_s14 }
 0xa5b   :  { %v2034_v22 = vpop.eup %2033 }
 0xa5e   :  { %v1246_v42 = vpop.f32.mrf.mxu3  ;;  %v1435_v9 = vpop.f32.mrf.mxu1 }
 0xa5f   :  { %v1441_v12 = vmul.f32 %v2026_v11, %v1435_v9  ;;  %v1253_v39 = vmul.f32 %v2034_v22, %v1246_v42  ;;  %v1618_v42 = vld [vmem:[%s2743_s10 + $0x38] sm:$0xff] }
 0xa60   :  { %v1642_v22 = vld [vmem:[%s2743_s10 + $0xf8] sm:$0xff] }
 0xa61   :  { %1462 = vrot.lane.b32.xlu1 %v1441_v12, %s2103_s14  ;;  %1667 = vmatpush.msrb.mxu3 %v1642_v22 }
 0xa66   :  { %v1248_v13 = vpop.f32.mrf.mxu3 }
 0xa67   :  { %v1254_v25 = vmul.f32 %v2032_v14, %v1248_v13  ;;  %v1617_v13 = vld [vmem:[%s2743_s10 + $0x30] sm:$0xff] }
 0xa6e   :  { %v1371_v16 = vpop.f32.mrf.mxu3 }
 0xa6f   :  { %v1378_v20 = vmul.f32 %v2030_v19, %v1371_v16  ;;  %v1616_v16 = vld [vmem:[%s2743_s10 + $0x28] sm:$0xff]  ;;  %v1615_v19 = vld [vmem:[%s2743_s10 + $0x20] sm:$0xff] }
 0xa76   :  { %v1373_v17 = vpop.f32.mrf.mxu3 }
 0xa77   :  { %v1379_v18 = vmul.f32 %v2028_v1, %v1373_v17 }
 0xa79   :  { %1454 = vrot.lane.b32.xlu2 %v1379_v18, %s2101_s13  ;;  %v1928_v18 = vld [vmem:[%s2739_s6 + $0x2] ss:$0 sm:$0xff] }
 0xa81   :  { %1452 = vrot.lane.b32.xlu2 %v1378_v20, %s2101_s13 }
 0xac2   :  { %v1445_v26 = vpop.permute.xlu0 %1444 }
 0xac3   :  { %v1466_v41 = vsel %vm478_vm9, %v1253_v39, %v1445_v26  ;;  %v1613_v26 = vld [vmem:[%s2743_s10 + $0x10] sm:$0xff] }
 0xac4   :  { %v1641_v39 = vld [vmem:[%s2743_s10 + $0xf0] sm:$0xff] }
 0xac5   :  { %1668 = vmatpush.msrb.mxu3 %v1641_v39 }
 0xaca   :  { %v1447_v24 = vpop.permute.xlu1 %1446 }
 0xacb   :  { %v1467_v36 = vsel %vm478_vm9, %v1254_v25, %v1447_v24  ;;  %v1461_v44 = vpop.permute.xlu0 %1460  ;;  %vm1572_vm9 = vcmp.gt.f32.partialorder %v1570_v32, 0.0  ;;  %v1614_v24 = vld [vmem:[%s2743_s10 + $0x18] sm:$0xff] }
 0xacc   :  { %v1574_v51 = vsel %vm1572_vm9, 1, %v2096_v29  ;;  %v1638_v32 = vld [vmem:[%s2743_s10 + $0xd8] sm:$0xff] }
 0xad3   :  { %v1463_v30 = vpop.permute.xlu1 %1462  ;;  %v1455_v31 = vpop.permute.xlu2 %1454 }
 0xad4   :  { %v1469_v27 = vsel %vm225_vm1, %v1467_v36, %v1455_v31  ;;  %v1612_v31 = vld [vmem:[%s2743_s10 + $0x8] sm:$0xff] }
 0xad5   :  { %v1471_v34 = vsel %vm483_vm10, %v1469_v27, %v1463_v30 }
 0xad6   :  { %v1473_v35 = vsel %vm486_vm11, %v1471_v34, 0.0 }
 0xad7   :  { %v2590_v37 = vadd.f32 %v1927_v33, %v1473_v35 }
 0xad9   :  { %1483 = vadd.xlane.f32.xlu1 %v2590_v37  ;;  %v1488_v40 = vmul.f32 %v2590_v37, %v2590_v37 }
 0xadb   :  { %1491 = vadd.xlane.f32.xlu0 %v1488_v40  ;;  %v1453_v43 = vpop.permute.xlu2 %1452 }
 0xadc   :  { %v1468_v46 = vsel %vm225_vm1, %v1466_v41, %v1453_v43  ;;  %v1640_v43 = vld [vmem:[%s2743_s10 + $0xe8] sm:$0xff] }
 0xadd   :  { %v1470_v48 = vsel %vm483_vm10, %v1468_v46, %v1461_v44  ;;  %vm1571_vm10 = vcmp.gt.f32.partialorder %v1569_v47, 0.0  ;;  %v1639_v46 = vld [vmem:[%s2743_s10 + $0xe0] sm:$0xff]  ;;  %1669 = vmatpush.msrb.mxu3 %v1640_v43  ;;  %v1637_v47 = vld [vmem:[%s2743_s10 + $0xd0] sm:$0xff] }
 0xade   :  { %v1472_v38 = vsel %vm486_vm11, %v1470_v48, 0.0  ;;  %v1573_v52 = vsel %vm1571_vm10, 1, %v2096_v29  ;;  %v1625_v29 = vld [vmem:[%s2743_s10 + $0x70] sm:$0xff] }
 0xadf   :  { %v2599_v49 = vadd.f32 %v1927_v33, %v1472_v38  ;;  %1648 = vmatpush.msrb.mxu0 %v1625_v29  ;;  %v1611_v33 = vld [vmem:[%s2743_s10] sm:$0xff]  ;;  %1670 = vmatpush.msrb.mxu3 %v1639_v46 }
 0xae1   :  { %1481 = vadd.xlane.f32.xlu2 %v2599_v49  ;;  %v1487_v50 = vmul.f32 %v2599_v49, %v2599_v49  ;;  %1671 = vmatpush.msrb.mxu3 %v1638_v32 }
 0xae3   :  { %1672 = vmatpush.msrb.mxu3 %v1637_v47 }
 0xae9   :  { %1489 = vadd.xlane.f32.xlu2 %v1487_v50 }
 0xaef   :  { %1579 = vperm.xlu0 %1917, %v1574_v51  }
 0xaf2   :  { %1576 = vperm.xlu1 %1916, %v1573_v52  }
 0xaf7   :  { %1920 = vset.pattern.permute.xlu0 %v2095_v28 }
 0xafa   :  { %1919 = vset.pattern.permute.xlu1 %v2095_v28  ;;  %v1624_v28 = vld [vmem:[%s2743_s10 + $0x68] sm:$0xff] }
 0xafb   :  { %1596 = vperm.xlu1 %1919, %v1574_v51   ;;  %1649 = vmatpush.msrb.mxu0 %v1624_v28 }
 0xafd   :  { %1650 = vmatpush.msrb.mxu0 %v1623_v62 }
 0xaff   :  { %1651 = vmatpush.msrb.mxu0 %v1622_v63  ;;  %v1633_v63 = vld [vmem:[%s2743_s10 + $0xb0] sm:$0xff] }
 0xb01   :  { %1593 = vperm.xlu2 %1918, %v1573_v52   ;;  %1652 = vmatpush.msrb.mxu0 %v1621_v2 }
 0xb03   :  { %1653 = vmatpush.msrb.mxu0 %v1620_v55 }
 0xb05   :  { %1654 = vmatpush.msrb.mxu0 %v1619_v8  ;;  %v1630_v8 = vld [vmem:[%s2743_s10 + $0x98] sm:$0xff] }
 0xb07   :  { %1655 = vmatpush.msrb.mxu0 %v1618_v42  ;;  %v1629_v42 = vld [vmem:[%s2743_s10 + $0x90] sm:$0xff] }
 0xb09   :  { %1656 = vmatpush.msrb.mxu0 %v1617_v13  ;;  %v1628_v13 = vld [vmem:[%s2743_s10 + $0x88] sm:$0xff] }
 0xb0b   :  { %1657 = vmatpush.msrb.mxu0 %v1616_v16 }
 0xb0d   :  { %1658 = vmatpush.msrb.mxu0 %v1615_v19  ;;  %v1627_v19 = vld [vmem:[%s2743_s10 + $0x80] sm:$0xff] }
 0xb0f   :  { %1659 = vmatpush.msrb.mxu0 %v1614_v24 }
 0xb11   :  { %1660 = vmatpush.msrb.mxu0 %v1613_v26 }
 0xb13   :  { %1661 = vmatpush.msrb.mxu0 %v1612_v31 }
 0xb15   :  { %1662 = vmatpush.msrb.mxu0 %v1611_v33 }
 0xb4c   :  { %v1484_v45 = vpop.xlane.xlu1 %1483 }
 0xb4d   :  { %v1486_v53 = vmul.f32 0.03125, %v1484_v45 }
 0xb4e   :  { %v1492_v54 = vpop.xlane.xlu0 %1491 }
 0xb4f   :  { %v1496_v56 = vmul.f32 %v1486_v53, %v1486_v53  ;;  %v1494_v57 = vmul.f32 0.03125, %v1492_v54  ;;  %v1500_v17 = vsub.f32 %v2590_v37, %v1486_v53 }
 0xb51   :  { %v1498_v59 = vsub.f32 %v1494_v57, %v1496_v56  ;;  %v1635_v56 = vld [vmem:[%s2743_s10 + $0xc0] sm:$0xff] }
 0xb53   :  { %v1502_v60 = vadd.f32 1e-05, %v1498_v59  ;;  %v1634_v59 = vld [vmem:[%s2743_s10 + $0xb8] sm:$0xff] }
 0xb54   :  { %v1482_v61 = vpop.xlane.xlu2 %1481 }
 0xb55   :  { %2035 = vrsqrt.f32 %v1502_v60  ;;  %v2629_v0 = vmul.f32 0.03125, %v1482_v61  ;;  %vm1519_vm5 = vweird.f32 %v1502_v60 }
 0xb57   :  { %v1495_v6 = vmul.f32 %v2629_v0, %v2629_v0  ;;  %v1499_v48 = vsub.f32 %v2599_v49, %v2629_v0  ;;  %v1636_v49 = vld [vmem:[%s2743_s10 + $0xc8] sm:$0xff] }
 0xb58   :  { %1673 = vmatpush.msrb.mxu3 %v1636_v49 }
 0xb5a   :  { %1674 = vmatpush.msrb.mxu3 %v1635_v56 }
 0xb5b   :  { %v2036_v3 = vpop.eup %2035 }
 0xb5c   :  { %v1514_v4 = vmul.f32 %v2036_v3, %v1502_v60  ;;  %v1490_v5 = vpop.xlane.xlu2 %1489  ;;  %vm1520_vm11 = vweird.f32 %v2036_v3  ;;  %1675 = vmatpush.msrb.mxu3 %v1634_v59 }
 0xb5d   :  { %v1493_v7 = vmul.f32 0.03125, %v1490_v5  ;;  %vm1521_vm6 = vmor %vm1519_vm5, %vm1520_vm11  ;;  %v1631_v5 = vld [vmem:[%s2743_s10 + $0xa0] sm:$0xff] }
 0xb5e   :  { %v1515_v10 = vmul.f32 %v2036_v3, %v1514_v4  ;;  %1676 = vmatpush.msrb.mxu3 %v1633_v63 }
 0xb5f   :  { %v1497_v11 = vsub.f32 %v1493_v7, %v1495_v6 }
 0xb60   :  { %v1516_v9 = vmul.f32 0.5, %v1515_v10 }
 0xb61   :  { %v1501_v12 = vadd.f32 1e-05, %v1497_v11  ;;  %v1580_v45 = vpop.permute.xlu0 %1579 }
 0xb62   :  { %v1517_v15 = vsub.f32 1.5, %v1516_v9  ;;  %vm1582_vm15 = vcmp.eq.s32.totalorder %v1580_v45, 1 }
 0xb63   :  { %2037 = vrsqrt.f32 %v1501_v12  ;;  %vm1509_vm12 = vweird.f32 %v1501_v12 }
 0xb64   :  { %v1518_v1 = vmul.f32 %v2036_v3, %v1517_v15  ;;  %v1577_v34 = vpop.permute.xlu1 %1576  ;;  %v1594_v53 = vpop.permute.xlu2 %1593 }
 0xb65   :  { %vm1581_vm2 = vcmp.eq.s32.totalorder %v1577_v34, 1  ;;  %vm1598_vm3 = vcmp.eq.s32.totalorder %v1594_v53, 1 }
 0xb66   :  { %v1522_v20 = vsel %vm1521_vm6, %v2036_v3, %v1518_v1  ;;  %v1632_v3 = vld [vmem:[%s2743_s10 + $0xa8] sm:$0xff] }
 0xb67   :  { %v1524_v23 = vmul.f32 %v1522_v20, %v1500_v17  ;;  %1677 = vmatpush.msrb.mxu3 %v1632_v3 }
 0xb69   :  { %v2038_v14 = vpop.eup %2037  ;;  %v1531_v25 = vmul.f32 %v1928_v18, %v1524_v23  ;;  %1678 = vmatpush.msrb.mxu3 %v1631_v5 }
 0xb6a   :  { %v1504_v36 = vmul.f32 %v2038_v14, %v1501_v12  ;;  %vm1510_vm8 = vweird.f32 %v2038_v14 }
 0xb6b   :  { %v1538_v30 = vadd.f32 %v1929_v21, %v1531_v25  ;;  %vm1511_vm13 = vmor %vm1509_vm12, %vm1510_vm8  ;;  %1679 = vmatpush.msrb.mxu3 %v1630_v8 }
 0xb6c   :  { %v1505_v27 = vmul.f32 %v2038_v14, %v1504_v36 }
 0xb6d   :  { %vm1540_vm7 = vcmp.gt.f32.partialorder %v1538_v30, 0.0  ;;  %v1542_v35 = vmul.f32 0.1, %v1538_v30  ;;  %v1597_v52 = vpop.permute.xlu1 %1596  ;;  %1680 = vmatpush.msrb.mxu3 %v1629_v42 }
 0xb6e   :  { %v1506_v37 = vmul.f32 0.5, %v1505_v27  ;;  %vm1599_vm14 = vcmp.eq.s32.totalorder %v1597_v52, 1 }
 0xb6f   :  { %v1544_v40 = vsel %vm1540_vm7, %v1538_v30, %v1542_v35  ;;  %1681 = vmatpush.msrb.mxu3 %v1628_v13 }
 0xb70   :  { %v1507_v41 = vsub.f32 1.5, %v1506_v37  ;;  %1563 = vmatpush.msra.mxu2 %v1544_v40  ;;  %v1601_v60 = vsel %vm1599_vm14, %v1544_v40, -1e+09  ;;  %v1584_v28 = vsel %vm1582_vm15, %v1544_v40, -1e+09 }
 0xb71   :  { %1682 = vmatpush.msrb.mxu3 %v1627_v19 }
 0xb72   :  { %v1508_v44 = vmul.f32 %v2038_v14, %v1507_v41 }
 0xb74   :  { %v1512_v38 = vsel %vm1511_vm13, %v2038_v14, %v1508_v44 }
 0xb75   :  { %v1523_v50 = vmul.f32 %v1512_v38, %v1499_v48 }
 0xb77   :  { %v1530_v51 = vmul.f32 %v1928_v18, %v1523_v50 }
 0xb79   :  { %v1537_v54 = vadd.f32 %v1929_v21, %v1530_v51  ;;  %v1930_v21 = vld [vmem:[%s2744_s11] ss:$0 sm:$0xff] }
 0xb7b   :  { %vm1539_vm0 = vcmp.gt.f32.partialorder %v1537_v54, 0.0  ;;  %v1541_v57 = vmul.f32 0.1, %v1537_v54 }
 0xb7d   :  { %v1543_v29 = vsel %vm1539_vm0, %v1537_v54, %v1541_v57 }
 0xb7e   :  { %v1583_v61 = vsel %vm1581_vm2, %v1543_v29, -1e+09  ;;  %v1600_v62 = vsel %vm1598_vm3, %v1543_v29, -1e+09  ;;  %1564 = vmatpush.msra.mxu2 %v1543_v29 }
 0xb7f   :  { %v1585_v0 = vmax.f32 %v1583_v61, %v1584_v28  ;;  %v1602_v2 = vmax.f32 %v1600_v62, %v1601_v60  ;;  %1853 = vmatmul.msk.f32.vlgmr.msra.gmra.mxu2 %vm225_vm1, %v1545_v58  ;;  %vm1609_vm1 = vcmask 1040384  }
 0xb81   :  { %v1586_v55 = vrot.slane %v1585_v0, 4  ;;  %v1603_v4 = vrot.slane %v1602_v2, 4 }
 0xb83   :  { %v1587_v6 = vmax.f32 %v1585_v0, %v1586_v55  ;;  %v1604_v7 = vmax.f32 %v1602_v2, %v1603_v4 }
 0xb85   :  { %v1588_v10 = vrot.slane %v1587_v6, 2  ;;  %v1605_v11 = vrot.slane %v1604_v7, 2 }
 0xb87   :  { %v1589_v9 = vmax.f32 %v1587_v6, %v1588_v10  ;;  %v1606_v12 = vmax.f32 %v1604_v7, %v1605_v11 }
 0xb89   :  { %v1590_v15 = vrot.slane %v1589_v9, 1  ;;  %v1607_v16 = vrot.slane %v1606_v12, 1 }
 0xb8b   :  { %v1591_v1 = vmax.f32 %v1589_v9, %v1590_v15  ;;  %v1608_v17 = vmax.f32 %v1606_v12, %v1607_v16 }
 0xb8d   :  { %v1610_v18 = vsel %vm1609_vm1, %v1591_v1, %v1608_v17 }
 0xb8e   :  { %1663 = vmatmul.f32.vlgmr.msrb.gmra.mxu0 %v1610_v18 }
 0xc02   :  { %v1566_v20 = vpop.f32.mrf.mxu2 }
 0xc03   :  { %1683 = vmatmul.f32.vlgmr.msrb.gmra.mxu3 %v1566_v20 }
 0xc0b   :  { %v1664_v23 = vpop.f32.mrf.mxu0 }
 0xc0c   :  { %v1665_v24 = vadd.f32 %v1930_v21, %v1664_v23 }
 0xc86   :  { %v1684_v14 = vpop.f32.mrf.mxu3 }
 0xc87   :  { %v1685_v25 = vadd.f32 %v1684_v14, %v1665_v24 }
 0xc89   :  { %1687 = vst [vmem:[#allocation5] sm:$0x3] %v1685_v25 }
 0xc8a   :  { %1698 = dma.vmem_to_hbm [thread:$0]  %s1694_s19, 32, %s1696_s5, [#allocation4]  }
 0xc8b   :  { %2089 = dma.done.wait [#allocation4], 32  }
 0xc8c   :  { %2090 = vsyncadd [#allocation4], 4294967264 }
 0xc8d   :  { %1703 = vsyncpa [#allocation3], 1 }
 0xc8e   :  { %1704 = vsyncpa [#allocation4], 1 }

</bundles_post_ra>
